<compile_context>
chip_gen: v7x
topology: tpu7x:2x2x1
jax: 0.10.0
libtpu: 0.0.40
codegen_flags: <defaults>
</compile_context>

<pallas_src>
import functools

import jax
import jax.numpy as jnp
import numpy as np
from jax.experimental import pallas as pl
from jax.experimental.pallas import tpu as pltpu


def _round_up(x, m):
    return (x + m - 1) // m * m


# ------------------------------------------------------------------ kernel ---
def _moe_expert_kernel(x_ref, g_ref, w1_ref, b1_ref, w2_ref, b2_ref,
                       wp_ref, bp_ref, o_ref):
    """One grid step == one tile of `tn` tokens.

    Expert weights (w1/w2/wp) are full-extent blocks with a constant index_map,
    i.e. resident in VMEM for the whole kernel.  E is small and static, so the
    expert loop is a Python unroll; gate weights of exactly 0 for non-top-k
    experts make this dense accumulation identical to sparse routing.
    """
    x = x_ref[...]                       # (tn, Cp)  bf16
    g = g_ref[...]                       # (tn, E)   f32
    num_experts = w1_ref.shape[0]

    acc = jnp.zeros(o_ref.shape, jnp.float32)
    for e in range(num_experts):         # static unroll
        h1 = jnp.dot(x, w1_ref[e], preferred_element_type=jnp.float32) + b1_ref[e]
        h2 = jnp.dot(x, w2_ref[e], preferred_element_type=jnp.float32) + b2_ref[e]
        h = h1 * (h2 * jax.lax.logistic(h2))          # linear_1(x) * silu(linear_2(x))
        y = jnp.dot(h.astype(wp_ref.dtype), wp_ref[e],
                    preferred_element_type=jnp.float32) + bp_ref[e]
        acc = acc + y * g[:, e:e + 1]                 # gate == 0 off the top-k
    o_ref[...] = acc


def moe_expert_ffn(x_flat, gates, w1, b1, w2, b2, wp, bp, *, tn=128,
                   compute_dtype=jnp.bfloat16):
    """x_flat: (N, C) f32; gates: (N, E) f32; w1/w2: (E, C, H); wp: (E, H, C)."""
    N, C = x_flat.shape
    E, _, H = w1.shape

    Cp = _round_up(C, 128)               # lane-dense feature dims
    Hp = _round_up(H, 128)
    Np = _round_up(N, tn)                # token tiles of 128

    # Zero-padding is exact: padded x/W entries are 0, padded bias lanes are 0,
    # padded token rows get gate 0, and the padded region is sliced off below.
    xp = jnp.pad(x_flat.astype(compute_dtype), ((0, Np - N), (0, Cp - C)))
    gp = jnp.pad(gates.astype(jnp.float32), ((0, Np - N), (0, 0)))
    w1p = jnp.pad(w1.astype(compute_dtype), ((0, 0), (0, Cp - C), (0, Hp - H)))
    w2p = jnp.pad(w2.astype(compute_dtype), ((0, 0), (0, Cp - C), (0, Hp - H)))
    wpp = jnp.pad(wp.astype(compute_dtype), ((0, 0), (0, Hp - H), (0, Cp - C)))
    b1p = jnp.pad(b1.astype(jnp.float32), ((0, 0), (0, Hp - H)))[:, None, :]
    b2p = jnp.pad(b2.astype(jnp.float32), ((0, 0), (0, Hp - H)))[:, None, :]
    bpp = jnp.pad(bp.astype(jnp.float32), ((0, 0), (0, Cp - C)))[:, None, :]

    w_itemsize = np.dtype(compute_dtype).itemsize
    resident_bytes = E * 3 * Cp * Hp * w_itemsize + E * (2 * Hp + Cp) * 4
    assert resident_bytes <= 32 * 1024 * 1024, (
        "expert weights too large to keep resident in VMEM")
    # TODO(synk): for large models (weights > VMEM budget) switch to an H/C-tiled
    # grid plus top-k grouped-GEMM routing via PrefetchScalarGridSpec scalar
    # prefetch (MegaBlocks pattern) instead of dense all-expert compute.

    out = pl.pallas_call(
        _moe_expert_kernel,
        out_shape=jax.ShapeDtypeStruct((Np, Cp), jnp.float32),
        grid_spec=pltpu.PrefetchScalarGridSpec(
            num_scalar_prefetch=0,
            grid=(Np // tn,),
            in_specs=[
                pl.BlockSpec((tn, Cp), lambda t: (t, 0)),        # x tile
                pl.BlockSpec((tn, E), lambda t: (t, 0)),         # gate tile
                pl.BlockSpec((E, Cp, Hp), lambda t: (0, 0, 0)),  # W1   (resident)
                pl.BlockSpec((E, 1, Hp), lambda t: (0, 0, 0)),   # b1   (resident)
                pl.BlockSpec((E, Cp, Hp), lambda t: (0, 0, 0)),  # W2   (resident)
                pl.BlockSpec((E, 1, Hp), lambda t: (0, 0, 0)),   # b2   (resident)
                pl.BlockSpec((E, Hp, Cp), lambda t: (0, 0, 0)),  # Wproj(resident)
                pl.BlockSpec((E, 1, Cp), lambda t: (0, 0, 0)),   # bproj(resident)
            ],
            out_specs=pl.BlockSpec((tn, Cp), lambda t: (t, 0)),
        ),
        compiler_params=pltpu.CompilerParams(
            dimension_semantics=("parallel",),          # token tiles split across TCs
            vmem_limit_bytes=48 * 1024 * 1024),         # > default scoped, < v7x 64 MiB
    )(xp, gp, w1p, b1p, w2p, b2p, wpp, bpp)

    return out[:N, :C]


# --------------------------------------------------------------- JAX "glue" ---
def gate_forward(x_flat, wg, k):
    """TopKMoEGate: noise_weight == 0 => noise is exactly zero."""
    logits = jnp.dot(x_flat, wg.T, precision=jax.lax.Precision.HIGHEST)   # (N, E)
    top_v, top_i = jax.lax.top_k(logits, k)
    N = logits.shape[0]
    sparse = jnp.full_like(logits, -jnp.inf)
    sparse = sparse.at[jnp.arange(N)[:, None], top_i].set(top_v)
    gates = jax.nn.softmax(sparse, axis=-1)             # exact zeros off the top-k
    return gates, top_i


def moe_layer_forward(x, params, *, k, num_experts):
    B, T, C = x.shape
    x_flat = x.reshape(B * T, C)
    gates, _ = gate_forward(x_flat, params["wg"], k)
    y_flat = moe_expert_ffn(
        x_flat, gates,
        params["w1"], params["b1"], params["w2"], params["b2"],
        params["wp"], params["bp"])
    # TODO(synk): world_size > 1 expert sharding + dist.all_reduce(SUM) would map
    # to a remote-DMA reduction (make_async_remote_copy); single device here.
    avg_weight_per_expert = gates.mean(0)
    avg_tokens_per_expert = jnp.where(gates != 0, 1.0, 0.0).mean(0)
    aux_loss = (avg_tokens_per_expert * avg_weight_per_expert).sum() * num_experts
    return y_flat.reshape(B, T, C), aux_loss


def ref_forward(x, params, *, k, num_experts):
    """Pure-JAX f32 reference mirroring the PyTorch loop (correctness check)."""
    B, T, C = x.shape
    xf = x.reshape(B * T, C)
    gates, _ = gate_forward(xf, params["wg"], k)
    y = jnp.zeros_like(xf)
    for e in range(num_experts):
        h = (xf @ params["w1"][e] + params["b1"][e]) * \
            jax.nn.silu(xf @ params["w2"][e] + params["b2"][e])
        out = h @ params["wp"][e] + params["bp"][e]
        y = y + out * gates[:, e:e + 1]
    aux = (jnp.where(gates != 0, 1.0, 0.0).mean(0) * gates.mean(0)).sum() * num_experts
    return y.reshape(B, T, C), aux


def init_params(key, n_embd, hidden, num_experts):
    ks = jax.random.split(key, 8)
    s = 0.02
    return {
        "wg": jax.random.normal(ks[0], (num_experts, n_embd), jnp.float32) * s,
        "w1": jax.random.normal(ks[1], (num_experts, n_embd, hidden), jnp.float32) * s,
        "b1": jax.random.normal(ks[2], (num_experts, hidden), jnp.float32) * s,
        "w2": jax.random.normal(ks[3], (num_experts, n_embd, hidden), jnp.float32) * s,
        "b2": jax.random.normal(ks[4], (num_experts, hidden), jnp.float32) * s,
        "wp": jax.random.normal(ks[5], (num_experts, hidden, n_embd), jnp.float32) * s,
        "bp": jax.random.normal(ks[6], (num_experts, n_embd), jnp.float32) * s,
    }


if __name__ == "__main__":
    # Small config consistent with the module: n_embd=32 -> hidden=128,
    # 4 experts, top-k=2, batch=2, seq_len=80 (=> 160 tokens, 2 token tiles
    # after padding to 128 so the parallel grid axis is exercised).
    B, T, C = 2, 80, 32
    NUM_EXPERTS, K = 4, 2
    HIDDEN = 4 * C

    key = jax.random.PRNGKey(0)
    kx, kp = jax.random.split(key)
    x = jax.random.normal(kx, (B, T, C), jnp.float32)
    params = init_params(kp, C, HIDDEN, NUM_EXPERTS)

    fwd = jax.jit(functools.partial(moe_layer_forward, k=K, num_experts=NUM_EXPERTS))
    y, aux = fwd(x, params)
    y = jax.block_until_ready(y)
    aux = jax.block_until_ready(aux)

    y_ref, aux_ref = ref_forward(x, params, k=K, num_experts=NUM_EXPERTS)
    # bf16 matmul inputs with f32 accumulation -> compare with bf16-level tolerance.
    np.testing.assert_allclose(np.asarray(y), np.asarray(y_ref), rtol=2e-2, atol=2e-3)
    np.testing.assert_allclose(np.asarray(aux), np.asarray(aux_ref), rtol=1e-5, atol=1e-6)

    print("KERNEL_OK")
</pallas_src>

<mosaic_0001>
module attributes {stable_mosaic.version = 11 : i64} {
  func.func @_moe_expert_kernel(%arg0: i32, %arg1: memref<128x128xbf16, #tpu.memory_space<vmem>>, %arg2: memref<128x4xf32, #tpu.memory_space<vmem>>, %arg3: memref<4x128x128xbf16, #tpu.memory_space<vmem>>, %arg4: memref<4x1x128xf32, #tpu.memory_space<vmem>>, %arg5: memref<4x128x128xbf16, #tpu.memory_space<vmem>>, %arg6: memref<4x1x128xf32, #tpu.memory_space<vmem>>, %arg7: memref<4x128x128xbf16, #tpu.memory_space<vmem>>, %arg8: memref<4x1x128xf32, #tpu.memory_space<vmem>>, %arg9: memref<128x128xf32, #tpu.memory_space<vmem>>) attributes {dimension_semantics = [#tpu.dimension_semantics<parallel>], iteration_bounds = array<i64: 2>, scalar_prefetch = 0 : i64, scratch_operands = 0 : i64, tpu.core_type = #tpu.core_type<tc>, window_params = [{transform_indices = @transform_0, window_bounds = array<i64: 128, 128>}, {transform_indices = @transform_1, window_bounds = array<i64: 128, 4>}, {pipeline_mode = #tpu.pipeline_mode<synchronous>, transform_indices = @transform_2, window_bounds = array<i64: 4, 128, 128>}, {pipeline_mode = #tpu.pipeline_mode<synchronous>, transform_indices = @transform_3, window_bounds = array<i64: 4, 1, 128>}, {pipeline_mode = #tpu.pipeline_mode<synchronous>, transform_indices = @transform_4, window_bounds = array<i64: 4, 128, 128>}, {pipeline_mode = #tpu.pipeline_mode<synchronous>, transform_indices = @transform_5, window_bounds = array<i64: 4, 1, 128>}, {pipeline_mode = #tpu.pipeline_mode<synchronous>, transform_indices = @transform_6, window_bounds = array<i64: 4, 128, 128>}, {pipeline_mode = #tpu.pipeline_mode<synchronous>, transform_indices = @transform_7, window_bounds = array<i64: 4, 1, 128>}, {transform_indices = @transform_8, window_bounds = array<i64: 128, 128>}]} {
    %c0 = arith.constant 0 : index
    %c0_0 = arith.constant 0 : index
    %0 = vector.load %arg1[%c0, %c0_0] : memref<128x128xbf16, #tpu.memory_space<vmem>>, vector<128x128xbf16>
    %c0_1 = arith.constant 0 : index
    %c0_2 = arith.constant 0 : index
    %1 = vector.load %arg2[%c0_1, %c0_2] : memref<128x4xf32, #tpu.memory_space<vmem>>, vector<128x4xf32>
    %cst = arith.constant 0.000000e+00 : f32
    %2 = vector.broadcast %cst : f32 to vector<128x128xf32>
    %c0_3 = arith.constant 0 : index
    %c0_4 = arith.constant 0 : index
    %c0_5 = arith.constant 0 : index
    %3 = vector.load %arg3[%c0_3, %c0_4, %c0_5] : memref<4x128x128xbf16, #tpu.memory_space<vmem>>, vector<1x128x128xbf16>
    %4 = vector.shape_cast %3 : vector<1x128x128xbf16> to vector<128x128xbf16>
    %cst_6 = arith.constant dense<0.000000e+00> : vector<128x128xf32>
    %5 = tpu.matmul %0, %4, %cst_6 {dimension_numbers = #tpu.dot_dimension_numbers<[1], [0], [0], [1], [0, 0, 1, 1], [], []>} : vector<128x128xbf16>, vector<128x128xbf16>, vector<128x128xf32> -> vector<128x128xf32>
    %c0_7 = arith.constant 0 : index
    %c0_8 = arith.constant 0 : index
    %c0_9 = arith.constant 0 : index
    %6 = vector.load %arg4[%c0_7, %c0_8, %c0_9] : memref<4x1x128xf32, #tpu.memory_space<vmem>>, vector<1x1x128xf32>
    %7 = vector.shape_cast %6 : vector<1x1x128xf32> to vector<1x128xf32>
    %8 = vector.broadcast %7 : vector<1x128xf32> to vector<128x128xf32>
    %9 = arith.addf %5, %8 : vector<128x128xf32>
    %c0_10 = arith.constant 0 : index
    %c0_11 = arith.constant 0 : index
    %c0_12 = arith.constant 0 : index
    %10 = vector.load %arg5[%c0_10, %c0_11, %c0_12] : memref<4x128x128xbf16, #tpu.memory_space<vmem>>, vector<1x128x128xbf16>
    %11 = vector.shape_cast %10 : vector<1x128x128xbf16> to vector<128x128xbf16>
    %cst_13 = arith.constant dense<0.000000e+00> : vector<128x128xf32>
    %12 = tpu.matmul %0, %11, %cst_13 {dimension_numbers = #tpu.dot_dimension_numbers<[1], [0], [0], [1], [0, 0, 1, 1], [], []>} : vector<128x128xbf16>, vector<128x128xbf16>, vector<128x128xf32> -> vector<128x128xf32>
    %c0_14 = arith.constant 0 : index
    %c0_15 = arith.constant 0 : index
    %c0_16 = arith.constant 0 : index
    %13 = vector.load %arg6[%c0_14, %c0_15, %c0_16] : memref<4x1x128xf32, #tpu.memory_space<vmem>>, vector<1x1x128xf32>
    %14 = vector.shape_cast %13 : vector<1x1x128xf32> to vector<1x128xf32>
    %15 = vector.broadcast %14 : vector<1x128xf32> to vector<128x128xf32>
    %16 = arith.addf %12, %15 : vector<128x128xf32>
    %17 = arith.negf %16 : vector<128x128xf32>
    %18 = math.exp %17 : vector<128x128xf32>
    %cst_17 = arith.constant 1.000000e+00 : f32
    %19 = vector.broadcast %cst_17 : f32 to vector<128x128xf32>
    %20 = arith.addf %19, %18 : vector<128x128xf32>
    %21 = arith.divf %19, %20 : vector<128x128xf32>
    %22 = arith.mulf %16, %21 : vector<128x128xf32>
    %23 = arith.mulf %9, %22 : vector<128x128xf32>
    %24 = arith.truncf %23 : vector<128x128xf32> to vector<128x128xbf16>
    %c0_18 = arith.constant 0 : index
    %c0_19 = arith.constant 0 : index
    %c0_20 = arith.constant 0 : index
    %25 = vector.load %arg7[%c0_18, %c0_19, %c0_20] : memref<4x128x128xbf16, #tpu.memory_space<vmem>>, vector<1x128x128xbf16>
    %26 = vector.shape_cast %25 : vector<1x128x128xbf16> to vector<128x128xbf16>
    %cst_21 = arith.constant dense<0.000000e+00> : vector<128x128xf32>
    %27 = tpu.matmul %24, %26, %cst_21 {dimension_numbers = #tpu.dot_dimension_numbers<[1], [0], [0], [1], [0, 0, 1, 1], [], []>} : vector<128x128xbf16>, vector<128x128xbf16>, vector<128x128xf32> -> vector<128x128xf32>
    %c0_22 = arith.constant 0 : index
    %c0_23 = arith.constant 0 : index
    %c0_24 = arith.constant 0 : index
    %28 = vector.load %arg8[%c0_22, %c0_23, %c0_24] : memref<4x1x128xf32, #tpu.memory_space<vmem>>, vector<1x1x128xf32>
    %29 = vector.shape_cast %28 : vector<1x1x128xf32> to vector<1x128xf32>
    %30 = vector.broadcast %29 : vector<1x128xf32> to vector<128x128xf32>
    %31 = arith.addf %27, %30 : vector<128x128xf32>
    %32 = vector.extract_strided_slice %1 {offsets = [0, 0], sizes = [128, 1], strides = [1, 1]} : vector<128x4xf32> to vector<128x1xf32>
    %33 = vector.broadcast %32 : vector<128x1xf32> to vector<128x128xf32>
    %34 = arith.mulf %31, %33 : vector<128x128xf32>
    %35 = arith.addf %2, %34 : vector<128x128xf32>
    %c1 = arith.constant 1 : index
    %c0_25 = arith.constant 0 : index
    %c0_26 = arith.constant 0 : index
    %36 = vector.load %arg3[%c1, %c0_25, %c0_26] : memref<4x128x128xbf16, #tpu.memory_space<vmem>>, vector<1x128x128xbf16>
    %37 = vector.shape_cast %36 : vector<1x128x128xbf16> to vector<128x128xbf16>
    %cst_27 = arith.constant dense<0.000000e+00> : vector<128x128xf32>
    %38 = tpu.matmul %0, %37, %cst_27 {dimension_numbers = #tpu.dot_dimension_numbers<[1], [0], [0], [1], [0, 0, 1, 1], [], []>} : vector<128x128xbf16>, vector<128x128xbf16>, vector<128x128xf32> -> vector<128x128xf32>
    %c1_28 = arith.constant 1 : index
    %c0_29 = arith.constant 0 : index
    %c0_30 = arith.constant 0 : index
    %39 = vector.load %arg4[%c1_28, %c0_29, %c0_30] : memref<4x1x128xf32, #tpu.memory_space<vmem>>, vector<1x1x128xf32>
    %40 = vector.shape_cast %39 : vector<1x1x128xf32> to vector<1x128xf32>
    %41 = vector.broadcast %40 : vector<1x128xf32> to vector<128x128xf32>
    %42 = arith.addf %38, %41 : vector<128x128xf32>
    %c1_31 = arith.constant 1 : index
    %c0_32 = arith.constant 0 : index
    %c0_33 = arith.constant 0 : index
    %43 = vector.load %arg5[%c1_31, %c0_32, %c0_33] : memref<4x128x128xbf16, #tpu.memory_space<vmem>>, vector<1x128x128xbf16>
    %44 = vector.shape_cast %43 : vector<1x128x128xbf16> to vector<128x128xbf16>
    %cst_34 = arith.constant dense<0.000000e+00> : vector<128x128xf32>
    %45 = tpu.matmul %0, %44, %cst_34 {dimension_numbers = #tpu.dot_dimension_numbers<[1], [0], [0], [1], [0, 0, 1, 1], [], []>} : vector<128x128xbf16>, vector<128x128xbf16>, vector<128x128xf32> -> vector<128x128xf32>
    %c1_35 = arith.constant 1 : index
    %c0_36 = arith.constant 0 : index
    %c0_37 = arith.constant 0 : index
    %46 = vector.load %arg6[%c1_35, %c0_36, %c0_37] : memref<4x1x128xf32, #tpu.memory_space<vmem>>, vector<1x1x128xf32>
    %47 = vector.shape_cast %46 : vector<1x1x128xf32> to vector<1x128xf32>
    %48 = vector.broadcast %47 : vector<1x128xf32> to vector<128x128xf32>
    %49 = arith.addf %45, %48 : vector<128x128xf32>
    %50 = arith.negf %49 : vector<128x128xf32>
    %51 = math.exp %50 : vector<128x128xf32>
    %cst_38 = arith.constant 1.000000e+00 : f32
    %52 = vector.broadcast %cst_38 : f32 to vector<128x128xf32>
    %53 = arith.addf %52, %51 : vector<128x128xf32>
    %54 = arith.divf %52, %53 : vector<128x128xf32>
    %55 = arith.mulf %49, %54 : vector<128x128xf32>
    %56 = arith.mulf %42, %55 : vector<128x128xf32>
    %57 = arith.truncf %56 : vector<128x128xf32> to vector<128x128xbf16>
    %c1_39 = arith.constant 1 : index
    %c0_40 = arith.constant 0 : index
    %c0_41 = arith.constant 0 : index
    %58 = vector.load %arg7[%c1_39, %c0_40, %c0_41] : memref<4x128x128xbf16, #tpu.memory_space<vmem>>, vector<1x128x128xbf16>
    %59 = vector.shape_cast %58 : vector<1x128x128xbf16> to vector<128x128xbf16>
    %cst_42 = arith.constant dense<0.000000e+00> : vector<128x128xf32>
    %60 = tpu.matmul %57, %59, %cst_42 {dimension_numbers = #tpu.dot_dimension_numbers<[1], [0], [0], [1], [0, 0, 1, 1], [], []>} : vector<128x128xbf16>, vector<128x128xbf16>, vector<128x128xf32> -> vector<128x128xf32>
    %c1_43 = arith.constant 1 : index
    %c0_44 = arith.constant 0 : index
    %c0_45 = arith.constant 0 : index
    %61 = vector.load %arg8[%c1_43, %c0_44, %c0_45] : memref<4x1x128xf32, #tpu.memory_space<vmem>>, vector<1x1x128xf32>
    %62 = vector.shape_cast %61 : vector<1x1x128xf32> to vector<1x128xf32>
    %63 = vector.broadcast %62 : vector<1x128xf32> to vector<128x128xf32>
    %64 = arith.addf %60, %63 : vector<128x128xf32>
    %65 = vector.extract_strided_slice %1 {offsets = [0, 1], sizes = [128, 1], strides = [1, 1]} : vector<128x4xf32> to vector<128x1xf32>
    %66 = vector.broadcast %65 : vector<128x1xf32> to vector<128x128xf32>
    %67 = arith.mulf %64, %66 : vector<128x128xf32>
    %68 = arith.addf %35, %67 : vector<128x128xf32>
    %c2 = arith.constant 2 : index
    %c0_46 = arith.constant 0 : index
    %c0_47 = arith.constant 0 : index
    %69 = vector.load %arg3[%c2, %c0_46, %c0_47] : memref<4x128x128xbf16, #tpu.memory_space<vmem>>, vector<1x128x128xbf16>
    %70 = vector.shape_cast %69 : vector<1x128x128xbf16> to vector<128x128xbf16>
    %cst_48 = arith.constant dense<0.000000e+00> : vector<128x128xf32>
    %71 = tpu.matmul %0, %70, %cst_48 {dimension_numbers = #tpu.dot_dimension_numbers<[1], [0], [0], [1], [0, 0, 1, 1], [], []>} : vector<128x128xbf16>, vector<128x128xbf16>, vector<128x128xf32> -> vector<128x128xf32>
    %c2_49 = arith.constant 2 : index
    %c0_50 = arith.constant 0 : index
    %c0_51 = arith.constant 0 : index
    %72 = vector.load %arg4[%c2_49, %c0_50, %c0_51] : memref<4x1x128xf32, #tpu.memory_space<vmem>>, vector<1x1x128xf32>
    %73 = vector.shape_cast %72 : vector<1x1x128xf32> to vector<1x128xf32>
    %74 = vector.broadcast %73 : vector<1x128xf32> to vector<128x128xf32>
    %75 = arith.addf %71, %74 : vector<128x128xf32>
    %c2_52 = arith.constant 2 : index
    %c0_53 = arith.constant 0 : index
    %c0_54 = arith.constant 0 : index
    %76 = vector.load %arg5[%c2_52, %c0_53, %c0_54] : memref<4x128x128xbf16, #tpu.memory_space<vmem>>, vector<1x128x128xbf16>
    %77 = vector.shape_cast %76 : vector<1x128x128xbf16> to vector<128x128xbf16>
    %cst_55 = arith.constant dense<0.000000e+00> : vector<128x128xf32>
    %78 = tpu.matmul %0, %77, %cst_55 {dimension_numbers = #tpu.dot_dimension_numbers<[1], [0], [0], [1], [0, 0, 1, 1], [], []>} : vector<128x128xbf16>, vector<128x128xbf16>, vector<128x128xf32> -> vector<128x128xf32>
    %c2_56 = arith.constant 2 : index
    %c0_57 = arith.constant 0 : index
    %c0_58 = arith.constant 0 : index
    %79 = vector.load %arg6[%c2_56, %c0_57, %c0_58] : memref<4x1x128xf32, #tpu.memory_space<vmem>>, vector<1x1x128xf32>
    %80 = vector.shape_cast %79 : vector<1x1x128xf32> to vector<1x128xf32>
    %81 = vector.broadcast %80 : vector<1x128xf32> to vector<128x128xf32>
    %82 = arith.addf %78, %81 : vector<128x128xf32>
    %83 = arith.negf %82 : vector<128x128xf32>
    %84 = math.exp %83 : vector<128x128xf32>
    %cst_59 = arith.constant 1.000000e+00 : f32
    %85 = vector.broadcast %cst_59 : f32 to vector<128x128xf32>
    %86 = arith.addf %85, %84 : vector<128x128xf32>
    %87 = arith.divf %85, %86 : vector<128x128xf32>
    %88 = arith.mulf %82, %87 : vector<128x128xf32>
    %89 = arith.mulf %75, %88 : vector<128x128xf32>
    %90 = arith.truncf %89 : vector<128x128xf32> to vector<128x128xbf16>
    %c2_60 = arith.constant 2 : index
    %c0_61 = arith.constant 0 : index
    %c0_62 = arith.constant 0 : index
    %91 = vector.load %arg7[%c2_60, %c0_61, %c0_62] : memref<4x128x128xbf16, #tpu.memory_space<vmem>>, vector<1x128x128xbf16>
    %92 = vector.shape_cast %91 : vector<1x128x128xbf16> to vector<128x128xbf16>
    %cst_63 = arith.constant dense<0.000000e+00> : vector<128x128xf32>
    %93 = tpu.matmul %90, %92, %cst_63 {dimension_numbers = #tpu.dot_dimension_numbers<[1], [0], [0], [1], [0, 0, 1, 1], [], []>} : vector<128x128xbf16>, vector<128x128xbf16>, vector<128x128xf32> -> vector<128x128xf32>
    %c2_64 = arith.constant 2 : index
    %c0_65 = arith.constant 0 : index
    %c0_66 = arith.constant 0 : index
    %94 = vector.load %arg8[%c2_64, %c0_65, %c0_66] : memref<4x1x128xf32, #tpu.memory_space<vmem>>, vector<1x1x128xf32>
    %95 = vector.shape_cast %94 : vector<1x1x128xf32> to vector<1x128xf32>
    %96 = vector.broadcast %95 : vector<1x128xf32> to vector<128x128xf32>
    %97 = arith.addf %93, %96 : vector<128x128xf32>
    %98 = vector.extract_strided_slice %1 {offsets = [0, 2], sizes = [128, 1], strides = [1, 1]} : vector<128x4xf32> to vector<128x1xf32>
    %99 = vector.broadcast %98 : vector<128x1xf32> to vector<128x128xf32>
    %100 = arith.mulf %97, %99 : vector<128x128xf32>
    %101 = arith.addf %68, %100 : vector<128x128xf32>
    %c3 = arith.constant 3 : index
    %c0_67 = arith.constant 0 : index
    %c0_68 = arith.constant 0 : index
    %102 = vector.load %arg3[%c3, %c0_67, %c0_68] : memref<4x128x128xbf16, #tpu.memory_space<vmem>>, vector<1x128x128xbf16>
    %103 = vector.shape_cast %102 : vector<1x128x128xbf16> to vector<128x128xbf16>
    %cst_69 = arith.constant dense<0.000000e+00> : vector<128x128xf32>
    %104 = tpu.matmul %0, %103, %cst_69 {dimension_numbers = #tpu.dot_dimension_numbers<[1], [0], [0], [1], [0, 0, 1, 1], [], []>} : vector<128x128xbf16>, vector<128x128xbf16>, vector<128x128xf32> -> vector<128x128xf32>
    %c3_70 = arith.constant 3 : index
    %c0_71 = arith.constant 0 : index
    %c0_72 = arith.constant 0 : index
    %105 = vector.load %arg4[%c3_70, %c0_71, %c0_72] : memref<4x1x128xf32, #tpu.memory_space<vmem>>, vector<1x1x128xf32>
    %106 = vector.shape_cast %105 : vector<1x1x128xf32> to vector<1x128xf32>
    %107 = vector.broadcast %106 : vector<1x128xf32> to vector<128x128xf32>
    %108 = arith.addf %104, %107 : vector<128x128xf32>
    %c3_73 = arith.constant 3 : index
    %c0_74 = arith.constant 0 : index
    %c0_75 = arith.constant 0 : index
    %109 = vector.load %arg5[%c3_73, %c0_74, %c0_75] : memref<4x128x128xbf16, #tpu.memory_space<vmem>>, vector<1x128x128xbf16>
    %110 = vector.shape_cast %109 : vector<1x128x128xbf16> to vector<128x128xbf16>
    %cst_76 = arith.constant dense<0.000000e+00> : vector<128x128xf32>
    %111 = tpu.matmul %0, %110, %cst_76 {dimension_numbers = #tpu.dot_dimension_numbers<[1], [0], [0], [1], [0, 0, 1, 1], [], []>} : vector<128x128xbf16>, vector<128x128xbf16>, vector<128x128xf32> -> vector<128x128xf32>
    %c3_77 = arith.constant 3 : index
    %c0_78 = arith.constant 0 : index
    %c0_79 = arith.constant 0 : index
    %112 = vector.load %arg6[%c3_77, %c0_78, %c0_79] : memref<4x1x128xf32, #tpu.memory_space<vmem>>, vector<1x1x128xf32>
    %113 = vector.shape_cast %112 : vector<1x1x128xf32> to vector<1x128xf32>
    %114 = vector.broadcast %113 : vector<1x128xf32> to vector<128x128xf32>
    %115 = arith.addf %111, %114 : vector<128x128xf32>
    %116 = arith.negf %115 : vector<128x128xf32>
    %117 = math.exp %116 : vector<128x128xf32>
    %cst_80 = arith.constant 1.000000e+00 : f32
    %118 = vector.broadcast %cst_80 : f32 to vector<128x128xf32>
    %119 = arith.addf %118, %117 : vector<128x128xf32>
    %120 = arith.divf %118, %119 : vector<128x128xf32>
    %121 = arith.mulf %115, %120 : vector<128x128xf32>
    %122 = arith.mulf %108, %121 : vector<128x128xf32>
    %123 = arith.truncf %122 : vector<128x128xf32> to vector<128x128xbf16>
    %c3_81 = arith.constant 3 : index
    %c0_82 = arith.constant 0 : index
    %c0_83 = arith.constant 0 : index
    %124 = vector.load %arg7[%c3_81, %c0_82, %c0_83] : memref<4x128x128xbf16, #tpu.memory_space<vmem>>, vector<1x128x128xbf16>
    %125 = vector.shape_cast %124 : vector<1x128x128xbf16> to vector<128x128xbf16>
    %cst_84 = arith.constant dense<0.000000e+00> : vector<128x128xf32>
    %126 = tpu.matmul %123, %125, %cst_84 {dimension_numbers = #tpu.dot_dimension_numbers<[1], [0], [0], [1], [0, 0, 1, 1], [], []>} : vector<128x128xbf16>, vector<128x128xbf16>, vector<128x128xf32> -> vector<128x128xf32>
    %c3_85 = arith.constant 3 : index
    %c0_86 = arith.constant 0 : index
    %c0_87 = arith.constant 0 : index
    %127 = vector.load %arg8[%c3_85, %c0_86, %c0_87] : memref<4x1x128xf32, #tpu.memory_space<vmem>>, vector<1x1x128xf32>
    %128 = vector.shape_cast %127 : vector<1x1x128xf32> to vector<1x128xf32>
    %129 = vector.broadcast %128 : vector<1x128xf32> to vector<128x128xf32>
    %130 = arith.addf %126, %129 : vector<128x128xf32>
    %131 = vector.extract_strided_slice %1 {offsets = [0, 3], sizes = [128, 1], strides = [1, 1]} : vector<128x4xf32> to vector<128x1xf32>
    %132 = vector.broadcast %131 : vector<128x1xf32> to vector<128x128xf32>
    %133 = arith.mulf %130, %132 : vector<128x128xf32>
    %134 = arith.addf %101, %133 : vector<128x128xf32>
    %c0_88 = arith.constant 0 : index
    %c0_89 = arith.constant 0 : index
    %135 = vector.load %arg9[%c0_88, %c0_89] : memref<128x128xf32, #tpu.memory_space<vmem>>, vector<128x128xf32>
    tpu.vector_store %arg9[%c0_88, %c0_89], %134 {strides = array<i32>} : memref<128x128xf32, #tpu.memory_space<vmem>>, vector<128x128xf32>,
    return
  }
  func.func @transform_0(%arg0: i32) -> (i32, i32) {
    %c0_i32 = arith.constant 0 : i32
    %c0_i32_0 = arith.constant 0 : i32
    return %arg0, %c0_i32 : i32, i32
  }
  func.func @transform_1(%arg0: i32) -> (i32, i32) {
    %c0_i32 = arith.constant 0 : i32
    %c0_i32_0 = arith.constant 0 : i32
    return %arg0, %c0_i32 : i32, i32
  }
  func.func @transform_2(%arg0: i32) -> (i32, i32, i32) {
    %c0_i32 = arith.constant 0 : i32
    %c0_i32_0 = arith.constant 0 : i32
    %c0_i32_1 = arith.constant 0 : i32
    %c0_i32_2 = arith.constant 0 : i32
    return %c0_i32, %c0_i32_0, %c0_i32_1 : i32, i32, i32
  }
  func.func @transform_3(%arg0: i32) -> (i32, i32, i32) {
    %c0_i32 = arith.constant 0 : i32
    %c0_i32_0 = arith.constant 0 : i32
    %c0_i32_1 = arith.constant 0 : i32
    %c0_i32_2 = arith.constant 0 : i32
    return %c0_i32, %c0_i32_0, %c0_i32_1 : i32, i32, i32
  }
  func.func @transform_4(%arg0: i32) -> (i32, i32, i32) {
    %c0_i32 = arith.constant 0 : i32
    %c0_i32_0 = arith.constant 0 : i32
    %c0_i32_1 = arith.constant 0 : i32
    %c0_i32_2 = arith.constant 0 : i32
    return %c0_i32, %c0_i32_0, %c0_i32_1 : i32, i32, i32
  }
  func.func @transform_5(%arg0: i32) -> (i32, i32, i32) {
    %c0_i32 = arith.constant 0 : i32
    %c0_i32_0 = arith.constant 0 : i32
    %c0_i32_1 = arith.constant 0 : i32
    %c0_i32_2 = arith.constant 0 : i32
    return %c0_i32, %c0_i32_0, %c0_i32_1 : i32, i32, i32
  }
  func.func @transform_6(%arg0: i32) -> (i32, i32, i32) {
    %c0_i32 = arith.constant 0 : i32
    %c0_i32_0 = arith.constant 0 : i32
    %c0_i32_1 = arith.constant 0 : i32
    %c0_i32_2 = arith.constant 0 : i32
    return %c0_i32, %c0_i32_0, %c0_i32_1 : i32, i32, i32
  }
  func.func @transform_7(%arg0: i32) -> (i32, i32, i32) {
    %c0_i32 = arith.constant 0 : i32
    %c0_i32_0 = arith.constant 0 : i32
    %c0_i32_1 = arith.constant 0 : i32
    %c0_i32_2 = arith.constant 0 : i32
    return %c0_i32, %c0_i32_0, %c0_i32_1 : i32, i32, i32
  }
  func.func @transform_8(%arg0: i32) -> (i32, i32) {
    %c0_i32 = arith.constant 0 : i32
    %c0_i32_0 = arith.constant 0 : i32
    return %arg0, %c0_i32 : i32, i32
  }
}

</mosaic_0001>

<bundles_post_ra>
// kernel: moe_layer_forward.1
= control target key start
LH: loop header
LB: loop body
LE: loop exit
PB: predicated region body
PF: predicated region fallthrough
CT: control target
= control target key end

     0   :  { %s4865_s27 = smov 0   ;;  %s6380_s0 = inlined_call_operand.vmem [shape: bf16[256,128], index: 0, kind: input, shape index: {}]   ;;  %s6381_s1 = inlined_call_operand.vmem [shape: f32[256,4], index: 1, kind: input, shape index: {}]   ;;  %s6382_s2 = inlined_call_operand.vmem [shape: bf16[4,128,128], index: 2, kind: input, shape index: {}]   ;;  %s6383_s3 = inlined_call_operand.vmem [shape: f32[4,1,128], index: 3, kind: input, shape index: {}]   ;;  %s6384_s4 = inlined_call_operand.vmem [shape: bf16[4,128,128], index: 4, kind: input, shape index: {}]   ;;  %s6385_s5 = inlined_call_operand.vmem [shape: f32[4,1,128], index: 5, kind: input, shape index: {}]   ;;  %s6386_s6 = inlined_call_operand.vmem [shape: bf16[4,128,128], index: 6, kind: input, shape index: {}]   ;;  %s6387_s7 = inlined_call_operand.vmem [shape: f32[4,1,128], index: 7, kind: input, shape index: {}]   ;;  %s6388_s8 = inlined_call_operand.vmem [shape: f32[256,128], index: 8, kind: output, shape index: {}]  }
   0x1 LB: > { %s3474_s28 = sadd.s32 4294967295, %s4814_s27   ;;  %p3478_p0 = scmp.ge.s32.totalorder %s4814_s27, 1  ;;  %s4814_s27 = sphi %s4865_s27, %s18_s27  }
   0x2   : > { %p274_p1 = scmp.lt.s32.totalorder %s4814_s27, 3 }
   0x4   : > { %p275_p2 = pnand %p3478_p0, %p274_p1 }
   0x6   : > { %278 = sbr.rel (%p275_p2) target bundleno = 1392 (0x570), region = 52 }
   0xd   : > { %v4416_v0 = vld [vmem:[%s6384_s4] sm:$0xff]   ;;  %s3479_s9 = sshll.u32 %s3474_s28, 4  ;;  %v4417_v1 = vld [vmem:[%s6384_s4 + $0x8] sm:$0xff]   ;;  %v4418_v2 = vld [vmem:[%s6384_s4 + $0x10] sm:$0xff]   ;;  %v4816_v41 = vmov 0  }
   0xe   : > { %p314_p3 = scmp.lt.s32.totalorder %s3479_s9, 31  ;;  %4044 = vmatprep.subr.bf16.mxu1 %v4416_v0  ;;  %v4423_v3 = vld [vmem:[%s6382_s2] sm:$0xff]   ;;  %v4419_v4 = vld [vmem:[%s6384_s4 + $0x18] sm:$0xff]   ;;  %v4425_v5 = vld [vmem:[%s6382_s2 + $0x8] sm:$0xff]   ;;  %4408 = vset.pattern.permute.xlu0 %v4816_v41 }
   0xf   : > { %4045 = vmatpush3.bf16.msra.mxu1 %v4416_v0  ;;  %4012 = vmatprep.subr.bf16.mxu0 %v4423_v3  ;;  %v4420_v7 = vld [vmem:[%s6384_s4 + $0x20] sm:$0xff]   ;;  %v4428_v8 = vld [vmem:[%s6382_s2 + $0x10] sm:$0xff]   ;;  %v4429_v9 = vld [vmem:[%s6382_s2 + $0x18] sm:$0xff]  }
  0x10   : > { %s6473_s9 = smov (!%p314_p3, %s3479_s9), 31  ;;  %4046 = vmatprep.subr.bf16.mxu1 %v4417_v1  ;;  %4013 = vmatpush3.bf16.msra.mxu0 %v4423_v3  ;;  %v4421_v10 = vld [vmem:[%s6384_s4 + $0x28] sm:$0xff]   ;;  %v4432_v11 = vld [vmem:[%s6382_s2 + $0x20] sm:$0xff]   ;;  %v4422_v12 = vld [vmem:[%s6384_s4 + $0x30] sm:$0xff]  }
  0x11   : > { %s3480_s14 = sshll.u32 %s6473_s9, 2  ;;  %4014 = vmatprep.subr.bf16.mxu0 %v4425_v5  ;;  %v4424_v13 = vld [vmem:[%s6384_s4 + $0x38] sm:$0xff]   ;;  %v4433_v14 = vld [vmem:[%s6382_s2 + $0x28] sm:$0xff]   ;;  %v4436_v15 = vld [vmem:[%s6382_s2 + $0x30] sm:$0xff]   ;;  %s3482_s21 = sshll.u32 %s6473_s9, 3  ;;  %4409 = vset.pattern.permute.xlu1 %v4816_v41 }
  0x12   : > { %s4891_s19 = scalar_lea.vmem %s6380_s0, %s3480_s14  ;;  %v4437_v18 = vld [vmem:[%s6382_s2 + $0x38] sm:$0xff]   ;;  %v4440_v24 = vld [vmem:[%s6386_s6] sm:$0xff]   ;;  %v4441_v25 = vld [vmem:[%s6386_s6 + $0x8] sm:$0xff]   ;;  %s5026_s24 = scalar_lea.vmem %s6381_s1, %s3482_s21 }
  0x13   : > { %4047 = vmatpush3.bf16.msra.mxu1 %v4417_v1  ;;  %v4426_v6 = vld [vmem:[%s4891_s19] sm:$0xff]   ;;  %v4928_v16 = vld [vmem:[%s4891_s19 + $0x8] sm:$0xff]   ;;  %v4931_v17 = vld [vmem:[%s4891_s19 + $0x10] sm:$0xff]   ;;  %s6330_s16 = scalar_lea.vmem %s6388_s8, %s3482_s21 }
  0x14   : > { %4048 = vmatprep.subr.bf16.mxu1 %v4418_v2  ;;  %4060 = vmatprep.mubr.bf16.mxu1 %v4426_v6  ;;  %v4939_v19 = vld [vmem:[%s4891_s19 + $0x18] sm:$0xff]   ;;  %v4942_v20 = vld [vmem:[%s4891_s19 + $0x20] sm:$0xff]   ;;  %v4949_v21 = vld [vmem:[%s4891_s19 + $0x28] sm:$0xff]  }
  0x15   : > { %4028 = vmatprep.mubr.bf16.mxu0 %v4426_v6  ;;  %4015 = vmatpush3.bf16.msra.mxu0 %v4425_v5  ;;  %v4952_v22 = vld [vmem:[%s4891_s19 + $0x30] sm:$0xff]   ;;  %v4959_v23 = vld [vmem:[%s4891_s19 + $0x38] sm:$0xff]   ;;  %v4444_v28 = vld [vmem:[%s6386_s6 + $0x20] sm:$0xff]  }
  0x16   : > { %4016 = vmatprep.subr.bf16.mxu0 %v4428_v8  ;;  %v4442_v26 = vld [vmem:[%s6386_s6 + $0x10] sm:$0xff]   ;;  %v4443_v27 = vld [vmem:[%s6386_s6 + $0x18] sm:$0xff]   ;;  %v4445_v29 = vld [vmem:[%s6386_s6 + $0x28] sm:$0xff]  }
  0x17   : > { %4049 = vmatpush3.bf16.msra.mxu1 %v4418_v2  ;;  %v4446_v30 = vld [vmem:[%s6386_s6 + $0x30] sm:$0xff]   ;;  %v4447_v31 = vld [vmem:[%s6386_s6 + $0x38] sm:$0xff]   ;;  %v4992_v32 = vld [vmem:[%s6384_s4 + $0x40] sm:$0xff]  }
  0x18   : > { %4050 = vmatprep.subr.bf16.mxu1 %v4419_v4  ;;  %v4455_v33 = vld [vmem:[%s6382_s2 + $0x40] sm:$0xff]   ;;  %v4457_v34 = vld [vmem:[%s6382_s2 + $0x48] sm:$0xff]   ;;  %v4458_v35 = vld [vmem:[%s6382_s2 + $0x50] sm:$0xff]  }
  0x19   : > { %4017 = vmatpush3.bf16.msra.mxu0 %v4428_v8  ;;  %v4459_v36 = vld [vmem:[%s6382_s2 + $0x58] sm:$0xff]   ;;  %v4460_v37 = vld [vmem:[%s6382_s2 + $0x60] sm:$0xff]   ;;  %v4461_v38 = vld [vmem:[%s6382_s2 + $0x68] sm:$0xff]  }
  0x1a   : > { %4018 = vmatprep.subr.bf16.mxu0 %v4429_v9  ;;  %v4462_v39 = vld [vmem:[%s6382_s2 + $0x70] sm:$0xff]   ;;  %v4463_v40 = vld [vmem:[%s6382_s2 + $0x78] sm:$0xff]   ;;  %v5030_v42 = vld [vmem:[%s5026_s24] sm:$0xff] }
  0x1b   : > { %4051 = vmatpush3.bf16.msra.mxu1 %v4419_v4  ;;  %v5033_v43 = vld [vmem:[%s5026_s24 + $0x10] sm:$0xff]  ;;  %1054 = vperm.xlu0 %4408, %v5030_v42   ;;  %v5038_v44 = vld [vmem:[%s5026_s24 + $0x8] sm:$0xff]  ;;  %v5041_v45 = vld [vmem:[%s5026_s24 + $0x18] sm:$0xff] }
  0x1c   : > { %4052 = vmatprep.subr.bf16.mxu1 %v4420_v7  ;;  %1064 = vperm.xlu1 %4409, %v5033_v43   ;;  %v5046_v46 = vld [vmem:[%s5026_s24 + $0x20] sm:$0xff]  ;;  %v5049_v47 = vld [vmem:[%s5026_s24 + $0x28] sm:$0xff]  ;;  %v5056_v48 = vld [vmem:[%s5026_s24 + $0x30] sm:$0xff] }
  0x1d   : > { %4019 = vmatpush3.bf16.msra.mxu0 %v4429_v9  ;;  %v5059_v49 = vld [vmem:[%s5026_s24 + $0x38] sm:$0xff]  ;;  %v5064_v50 = vld [vmem:[%s5026_s24 + $0x40] sm:$0xff]  ;;  %v5067_v51 = vld [vmem:[%s5026_s24 + $0x48] sm:$0xff] }
  0x1e   : > { %4020 = vmatprep.subr.bf16.mxu0 %v4432_v11  ;;  %v5074_v52 = vld [vmem:[%s5026_s24 + $0x50] sm:$0xff]  ;;  %v5077_v53 = vld [vmem:[%s5026_s24 + $0x58] sm:$0xff]  ;;  %v5082_v54 = vld [vmem:[%s5026_s24 + $0x60] sm:$0xff] }
  0x1f   : > { %4053 = vmatpush3.bf16.msra.mxu1 %v4420_v7  ;;  %1059 = vperm.xlu0 %4408, %v5038_v44   ;;  %6396 = vst [vmem:[#allocation2_spill] sm:$0xff] %v5074_v52  ;;  %6397 = vst [vmem:[#allocation3_spill] sm:$0xff] %v5077_v53  ;;  %v5085_v55 = vld [vmem:[%s5026_s24 + $0x68] sm:$0xff]  ;;  %v5091_v56 = vld [vmem:[%s5026_s24 + $0x70] sm:$0xff] }
  0x20   : > { %4054 = vmatprep.subr.bf16.mxu1 %v4421_v10  ;;  %1069 = vperm.xlu1 %4409, %v5041_v45   ;;  %6398 = vst [vmem:[#allocation4_spill] sm:$0xff] %v5082_v54  ;;  %6399 = vst [vmem:[#allocation5_spill] sm:$0xff] %v5085_v55  ;;  %v5094_v57 = vld [vmem:[%s5026_s24 + $0x78] sm:$0xff]  ;;  %v5099_v58 = vld [vmem:[%s6385_s5] ss:$0 sm:$0xff] }
  0x21   : > { %4021 = vmatpush3.bf16.msra.mxu0 %v4432_v11  ;;  %6400 = vst [vmem:[#allocation6_spill] sm:$0xff] %v5091_v56  ;;  %6401 = vst [vmem:[#allocation7_spill] sm:$0xff] %v5094_v57 }
  0x22   : > { %4022 = vmatprep.subr.bf16.mxu0 %v4433_v14 }
  0x23   : > { %4055 = vmatpush3.bf16.msra.mxu1 %v4421_v10  ;;  %1074 = vperm.xlu0 %4408, %v5046_v46  }
  0x24   : > { %4056 = vmatprep.subr.bf16.mxu1 %v4422_v12  ;;  %1079 = vperm.xlu1 %4409, %v5049_v47  }
  0x25   : > { %4023 = vmatpush3.bf16.msra.mxu0 %v4433_v14 }
  0x26   : > { %4024 = vmatprep.subr.bf16.mxu0 %v4436_v15 }
  0x27   : > { %4057 = vmatpush3.bf16.msra.mxu1 %v4422_v12  ;;  %1084 = vperm.xlu0 %4408, %v5056_v48  }
  0x28   : > { %4058 = vmatprep.subr.bf16.mxu1 %v4424_v13  ;;  %1089 = vperm.xlu1 %4409, %v5059_v49  }
  0x29   : > { %4025 = vmatpush3.bf16.msra.mxu0 %v4436_v15 }
  0x2a   : > { %4026 = vmatprep.subr.bf16.mxu0 %v4437_v18 }
  0x2b   : > { %4059 = vmatpush3.bf16.msra.mxu1 %v4424_v13  ;;  %1094 = vperm.xlu0 %4408, %v5064_v50  }
  0x2c   : > { %4108 = vmatprep.subr.bf16.mxu1 %v4455_v33  ;;  %1099 = vperm.xlu1 %4409, %v5067_v51  }
  0x2d   : > { %4027 = vmatpush3.bf16.msra.mxu0 %v4437_v18 }
  0x2e   : > { %4061 = vmatmul.mubr.bf16.vlgmr.msra.gmra.mrb[0].mxu1 %v4928_v16  ;;  %4076 = vmatprep.subr.bf16.mxu0 %v4440_v24 }
  0x2f   : > { %4064 = vmatprep.mubr.bf16.mxu1 %v4931_v17  ;;  %4109 = vmatpush3.bf16.msra.mxu1 %v4455_v33 }
  0x30   : > { %4029 = vmatmul.mubr.bf16.vlgmr.msra.gmra.mrb[0].mxu0 %v4928_v16  ;;  %4110 = vmatprep.subr.bf16.mxu1 %v4457_v34 }
  0x31   : > { %4032 = vmatprep.mubr.bf16.mxu0 %v4931_v17  ;;  %4077 = vmatpush3.bf16.msra.mxu0 %v4440_v24 }
  0x32   : > { %4078 = vmatprep.subr.bf16.mxu0 %v4441_v25  ;;  %1104 = vperm.xlu0 %4408, %v5074_v52  }
  0x33   : > { %4111 = vmatpush3.bf16.msra.mxu1 %v4457_v34  ;;  %1109 = vperm.xlu1 %4409, %v5077_v53  }
  0x34   : > { %4112 = vmatprep.subr.bf16.mxu1 %v4458_v35 }
  0x35   : > { %4079 = vmatpush3.bf16.msra.mxu0 %v4441_v25 }
  0x36   : > { %4065 = vmatmul.mubr.bf16.gmra.mrb[4].mxu1 %v4939_v19  ;;  %4080 = vmatprep.subr.bf16.mxu0 %v4442_v26 }
  0x37   : > { %4068 = vmatprep.mubr.bf16.mxu1 %v4942_v20  ;;  %4113 = vmatpush3.bf16.msra.mxu1 %v4458_v35 }
  0x38   : > { %4033 = vmatmul.mubr.bf16.gmra.mrb[4].mxu0 %v4939_v19  ;;  %4114 = vmatprep.subr.bf16.mxu1 %v4459_v36 }
  0x39   : > { %4036 = vmatprep.mubr.bf16.mxu0 %v4942_v20  ;;  %4081 = vmatpush3.bf16.msra.mxu0 %v4442_v26 }
  0x3a   : > { %4082 = vmatprep.subr.bf16.mxu0 %v4443_v27  ;;  %1114 = vperm.xlu0 %4408, %v5082_v54  }
  0x3b   : > { %4115 = vmatpush3.bf16.msra.mxu1 %v4459_v36  ;;  %1119 = vperm.xlu1 %4409, %v5085_v55  }
  0x3c   : > { %4116 = vmatprep.subr.bf16.mxu1 %v4460_v37 }
  0x3d   : > { %4083 = vmatpush3.bf16.msra.mxu0 %v4443_v27 }
  0x3e   : > { %4069 = vmatmul.mubr.bf16.gmra.mrb[8].mxu1 %v4949_v21  ;;  %4084 = vmatprep.subr.bf16.mxu0 %v4444_v28 }
  0x3f   : > { %4072 = vmatprep.mubr.bf16.mxu1 %v4952_v22  ;;  %4117 = vmatpush3.bf16.msra.mxu1 %v4460_v37 }
  0x40   : > { %4037 = vmatmul.mubr.bf16.gmra.mrb[8].mxu0 %v4949_v21  ;;  %4118 = vmatprep.subr.bf16.mxu1 %v4461_v38 }
  0x41   : > { %4040 = vmatprep.mubr.bf16.mxu0 %v4952_v22  ;;  %4085 = vmatpush3.bf16.msra.mxu0 %v4444_v28 }
  0x42   : > { %4086 = vmatprep.subr.bf16.mxu0 %v4445_v29  ;;  %1124 = vperm.xlu0 %4408, %v5091_v56  }
  0x43   : > { %4119 = vmatpush3.bf16.msra.mxu1 %v4461_v38  ;;  %1129 = vperm.xlu1 %4409, %v5094_v57  }
  0x44   : > { %4120 = vmatprep.subr.bf16.mxu1 %v4462_v39 }
  0x45   : > { %4087 = vmatpush3.bf16.msra.mxu0 %v4445_v29 }
  0x46   : > { %4073 = vmatmul.mubr.bf16.gmra.mrb[12].mxu1 %v4959_v23  ;;  %4088 = vmatprep.subr.bf16.mxu0 %v4446_v30 }
  0x47   : > { %4124 = vmatprep.mubr.bf16.mxu1 %v4426_v6  ;;  %4121 = vmatpush3.bf16.msra.mxu1 %v4462_v39 }
  0x48   : > { %4041 = vmatmul.mubr.bf16.gmra.mrb[12].mxu0 %v4959_v23  ;;  %4122 = vmatprep.subr.bf16.mxu1 %v4463_v40 }
  0x49   : > { %4089 = vmatpush3.bf16.msra.mxu0 %v4446_v30 }
  0x4a   : > { %4090 = vmatprep.subr.bf16.mxu0 %v4447_v31 }
  0x4b   : > { %4123 = vmatpush3.bf16.msra.mxu1 %v4463_v40 }
  0x4d   : > { %4091 = vmatpush3.bf16.msra.mxu0 %v4447_v31 }
  0x4e   : > { %4140 = vmatprep.subr.bf16.mxu0 %v4992_v32  ;;  %4125 = vmatmul.mubr.bf16.vlgmr.msra.gmra.mrb[16].mxu1 %v4928_v16 }
  0x4f   : > { %4128 = vmatprep.mubr.bf16.mxu1 %v4931_v17 }
  0x56   : > { %4129 = vmatmul.mubr.bf16.gmra.mrb[20].mxu1 %v4939_v19 }
  0x57   : > { %4132 = vmatprep.mubr.bf16.mxu1 %v4942_v20 }
  0x5e   : > { %4133 = vmatmul.mubr.bf16.gmra.mrb[24].mxu1 %v4949_v21 }
  0x5f   : > { %4136 = vmatprep.mubr.bf16.mxu1 %v4952_v22 }
  0x66   : > { %4137 = vmatmul.mubr.bf16.gmra.mrb[28].mxu1 %v4959_v23 }
 0x101   : > { %v4062_v59 = vpop.f32.mrb[0].mxu1 }
 0x102   : > { %v5104_v60 = vadd.f32 %v4062_v59, %v5099_v58  ;;  %v685_v61 = vpop.f32.mrb[1].mxu1 }
 0x103   : > { %v5107_v62 = vadd.f32 %v5099_v58, %v685_v61  ;;  %v4063_v63 = vpop.f32.mrb[2].mxu1  ;;  %v5119_v7 = vpop.f32.mrb[0].mxu0 }
 0x104   : > { %v3513_v0 = vmul.f32 -1.442695, %v5104_v60  ;;  %v5111_v1 = vadd.f32 %v4063_v63, %v5099_v58  ;;  %v688_v2 = vpop.f32.mrb[3].mxu1  ;;  %v5121_v9 = vpop.f32.mrb[1].mxu0 }
 0x105   : > { %v3511_v3 = vmul.f32 -1.442695, %v5107_v62  ;;  %v5115_v4 = vadd.f32 %v5099_v58, %v688_v2  ;;  %v5126_v12 = vpop.f32.mrb[2].mxu0 }
 0x106   : > { %4520 = vpow2.f32 %v3513_v0  ;;  %v3514_v5 = vmul.f32 -1.442695, %v5111_v1  ;;  %v5131_v15 = vpop.f32.mrb[3].mxu0 }
 0x107   : > { %4522 = vpow2.f32 %v3511_v3  ;;  %v3512_v6 = vmul.f32 -1.442695, %v5115_v4 }
 0x108   : > { %4524 = vpow2.f32 %v3514_v5 }
 0x109   : > { %4526 = vpow2.f32 %v3512_v6  ;;  %v4066_v8 = vpop.f32.mrb[4].mxu1 }
 0x10a   : > { %v5124_v10 = vadd.f32 %v4066_v8, %v5099_v58  ;;  %v701_v11 = vpop.f32.mrb[5].mxu1 }
 0x10b   : > { %v5129_v13 = vadd.f32 %v5099_v58, %v701_v11  ;;  %v4067_v14 = vpop.f32.mrb[6].mxu1  ;;  %v5143_v31 = vpop.f32.mrb[4].mxu0 }
 0x10c   : > { %v3517_v18 = vmul.f32 -1.442695, %v5124_v10  ;;  %v5135_v24 = vadd.f32 %v4067_v14, %v5099_v58  ;;  %v704_v25 = vpop.f32.mrb[7].mxu1  ;;  %v5145_v36 = vpop.f32.mrb[5].mxu0 }
 0x10d   : > { %v3515_v26 = vmul.f32 -1.442695, %v5129_v13  ;;  %v5139_v27 = vadd.f32 %v5099_v58, %v704_v25  ;;  %v5150_v41 = vpop.f32.mrb[6].mxu0 }
 0x10e   : > { %4528 = vpow2.f32 %v3517_v18  ;;  %v3518_v28 = vmul.f32 -1.442695, %v5135_v24  ;;  %v5155_v2 = vpop.f32.mrb[7].mxu0 }
 0x10f   : > { %4530 = vpow2.f32 %v3515_v26  ;;  %v3516_v29 = vmul.f32 -1.442695, %v5139_v27 }
 0x110   : > { %v4521_v30 = vpop.eup %4520  ;;  %4532 = vpow2.f32 %v3518_v28  ;;  %v5170_v28 = vld [vmem:[%s6383_s3] ss:$0 sm:$0xff] }
 0x111   : > { %v4523_v33 = vpop.eup %4522  ;;  %v798_v34 = vadd.f32 1.0, %v4521_v30  ;;  %4534 = vpow2.f32 %v3516_v29  ;;  %v4070_v35 = vpop.f32.mrb[8].mxu1 }
 0x112   : > { %v4525_v37 = vpop.eup %4524  ;;  %v796_v38 = vadd.f32 1.0, %v4523_v33  ;;  %v5148_v39 = vadd.f32 %v4070_v35, %v5099_v58  ;;  %v717_v40 = vpop.f32.mrb[9].mxu1 }
 0x113   : > { %v4527_v59 = vpop.eup %4526  ;;  %4536 = vrcp.f32 %v798_v34  ;;  %v799_v61 = vadd.f32 1.0, %v4525_v37  ;;  %v5153_v63 = vadd.f32 %v5099_v58, %v717_v40  ;;  %v4071_v0 = vpop.f32.mrb[10].mxu1 }
 0x114   : > { %4538 = vrcp.f32 %v796_v38  ;;  %v797_v3 = vadd.f32 1.0, %v4527_v59  ;;  %v3521_v5 = vmul.f32 -1.442695, %v5148_v39  ;;  %v5159_v6 = vadd.f32 %v4071_v0, %v5099_v58  ;;  %v720_v8 = vpop.f32.mrb[11].mxu1  ;;  %v5172_v29 = vpop.f32.mrb[8].mxu0 }
 0x115   : > { %4540 = vrcp.f32 %v799_v61  ;;  %v3519_v11 = vmul.f32 -1.442695, %v5153_v63  ;;  %v5163_v14 = vadd.f32 %v5099_v58, %v720_v8  ;;  %v5174_v35 = vpop.f32.mrb[9].mxu0 }
 0x116   : > { %4542 = vrcp.f32 %v797_v3  ;;  %v3522_v18 = vmul.f32 -1.442695, %v5159_v6  ;;  %v5179_v61 = vpop.f32.mrb[10].mxu0 }
 0x117   : > { %4544 = vpow2.f32 %v3521_v5  ;;  %v3520_v25 = vmul.f32 -1.442695, %v5163_v14  ;;  %v526_v5 = vadd.f32 %v5119_v7, %v5170_v28  ;;  %v518_v7 = vadd.f32 %v5170_v28, %v5121_v9 }
 0x118   : > { %v4529_v26 = vpop.eup %4528  ;;  %4546 = vpow2.f32 %v3519_v11 }
 0x119   : > { %v4531_v30 = vpop.eup %4530  ;;  %v802_v33 = vadd.f32 1.0, %v4529_v26  ;;  %4548 = vpow2.f32 %v3522_v18  ;;  %v4074_v34 = vpop.f32.mrb[12].mxu1 }
 0x11a   : > { %v4533_v37 = vpop.eup %4532  ;;  %v800_v38 = vadd.f32 1.0, %v4531_v30  ;;  %4550 = vpow2.f32 %v3520_v25  ;;  %v5177_v40 = vadd.f32 %v4074_v34, %v5099_v58  ;;  %v733_v59 = vpop.f32.mrb[13].mxu1 }
 0x11b   : > { %v4535_v0 = vpop.eup %4534  ;;  %4552 = vrcp.f32 %v802_v33  ;;  %v803_v3 = vadd.f32 1.0, %v4533_v37  ;;  %v5184_v8 = vadd.f32 %v5099_v58, %v733_v59  ;;  %v4075_v11 = vpop.f32.mrb[14].mxu1 }
 0x11c   : > { %v5186_v18 = vpop.f32.mrb[11].mxu0  ;;  %4554 = vrcp.f32 %v800_v38  ;;  %v801_v25 = vadd.f32 1.0, %v4535_v0  ;;  %v3525_v26 = vmul.f32 -1.442695, %v5177_v40  ;;  %v5190_v30 = vadd.f32 %v4075_v11, %v5099_v58  ;;  %v736_v34 = vpop.f32.mrb[15].mxu1 }
 0x11d   : > { %v4537_v57 = vpop.eup %4536  ;;  %4556 = vrcp.f32 %v803_v3  ;;  %v3523_v33 = vmul.f32 -1.442695, %v5184_v8  ;;  %v5196_v37 = vadd.f32 %v5099_v58, %v736_v34  ;;  %v529_v58 = vadd.f32 %v5126_v12, %v5170_v28  ;;  %v5205_v9 = vpop.f32.mrb[12].mxu0 }
 0x11e   : > { %v4539_v59 = vpop.eup %4538  ;;  %v846_v38 = vmul.f32 %v4537_v57, %v5104_v60  ;;  %4558 = vrcp.f32 %v801_v25  ;;  %v3526_v0 = vmul.f32 -1.442695, %v5190_v30 }
 0x11f   : > { %v4541_v56 = vpop.eup %4540  ;;  %v844_v11 = vmul.f32 %v4539_v59, %v5107_v62  ;;  %4560 = vpow2.f32 %v3525_v26  ;;  %v3524_v3 = vmul.f32 -1.442695, %v5196_v37  ;;  %v521_v62 = vadd.f32 %v5170_v28, %v5131_v15  ;;  %v5210_v26 = vpop.f32.mrb[13].mxu0 }
 0x120   : > { %v4543_v55 = vpop.eup %4542  ;;  %v847_v54 = vmul.f32 %v4541_v56, %v5111_v1  ;;  %v862_v53 = vmul.f32 %v846_v38, %v526_v5  ;;  %4562 = vpow2.f32 %v3523_v33  ;;  %v5212_v1 = vpop.f32.mrb[14].mxu0  ;;  %v542_v15 = vadd.f32 %v5143_v31, %v5170_v28 }
 0x121   : > { %v4545_v57 = vpop.eup %4544  ;;  %v845_v60 = vmul.f32 %v4543_v55, %v5115_v4  ;;  %v860_v25 = vmul.f32 %v844_v11, %v518_v7  ;;  %4564 = vpow2.f32 %v3526_v0  ;;  %v5214_v38 = vpop.f32.mrb[15].mxu0 }
 0x122   : > { %v4547_v34 = vpop.eup %4546  ;;  %v806_v59 = vadd.f32 1.0, %v4545_v57  ;;  %v863_v56 = vmul.f32 %v847_v54, %v529_v58  ;;  %4566 = vpow2.f32 %v3524_v3  ;;  %v534_v54 = vadd.f32 %v5170_v28, %v5145_v36  ;;  %v4449_v57 = vld [vmem:[%s6384_s4 + $0x48] sm:$0xff]  }
 0x123   : > { %v4549_v5 = vpop.eup %4548  ;;  %v804_v12 = vadd.f32 1.0, %v4547_v34  ;;  %v861_v33 = vmul.f32 %v845_v60, %v521_v62  ;;  %v545_v36 = vadd.f32 %v5150_v41, %v5170_v28 }
 0x124   : > { %v4551_v52 = vpop.eup %4550  ;;  %4568 = vrcp.f32 %v806_v59  ;;  %v807_v55 = vadd.f32 1.0, %v4549_v5  ;;  %v877_v4 = vpack.c.bf16 %v863_v56, %v862_v53  ;;  %v537_v59 = vadd.f32 %v5170_v28, %v5155_v2 }
 0x125   : > { %v4553_v7 = vpop.eup %4552  ;;  %4570 = vrcp.f32 %v804_v12  ;;  %v805_v0 = vadd.f32 1.0, %v4551_v52  ;;  %v876_v11 = vpack.c.bf16 %v861_v33, %v860_v25 }
 0x126   : > { %v4555_v3 = vpop.eup %4554  ;;  %v850_v58 = vmul.f32 %v4553_v7, %v5124_v10  ;;  %4572 = vrcp.f32 %v807_v55 }
 0x127   : > { %v4557_v60 = vpop.eup %4556  ;;  %v848_v53 = vmul.f32 %v4555_v3, %v5129_v13  ;;  %4574 = vrcp.f32 %v805_v0  ;;  %4092 = vmatprep.mubr.bf16.mxu0 %v876_v11  ;;  %v550_v0 = vadd.f32 %v5170_v28, %v5174_v35  ;;  %v561_v35 = vadd.f32 %v5179_v61, %v5170_v28 }
 0x128   : > { %v4559_v31 = vpop.eup %4558  ;;  %v851_v52 = vmul.f32 %v4557_v60, %v5135_v24  ;;  %v866_v62 = vmul.f32 %v850_v58, %v542_v15  ;;  %4093 = vmatmul.mubr.bf16.vlgmr.msra.gmra.mrb[16].mxu0 %v877_v4  ;;  %v4450_v24 = vld [vmem:[%s6384_s4 + $0x50] sm:$0xff]  }
 0x129   : > { %v4561_v25 = vpop.eup %4560  ;;  %v849_v10 = vmul.f32 %v4559_v31, %v5139_v27  ;;  %v864_v34 = vmul.f32 %v848_v53, %v534_v54  ;;  %4141 = vmatpush3.bf16.msra.mxu0 %v4992_v32  ;;  %v558_v32 = vadd.f32 %v5172_v29, %v5170_v28  ;;  %v4451_v54 = vld [vmem:[%s6384_s4 + $0x58] sm:$0xff]  }
 0x12a   : > { %v4563_v13 = vpop.eup %4562  ;;  %v810_v56 = vadd.f32 1.0, %v4561_v25  ;;  %v867_v5 = vmul.f32 %v851_v52, %v545_v36  ;;  %4142 = vmatprep.subr.bf16.mxu0 %v4449_v57 }
 0x12b   : > { %v4565_v12 = vpop.eup %4564  ;;  %v808_v41 = vadd.f32 1.0, %v4563_v13  ;;  %v865_v33 = vmul.f32 %v849_v10, %v537_v59  ;;  %v4453_v59 = vld [vmem:[%s6384_s4 + $0x68] sm:$0xff]  }
 0x12c   : > { %v4567_v55 = vpop.eup %4566  ;;  %4576 = vrcp.f32 %v810_v56  ;;  %v811_v27 = vadd.f32 1.0, %v4565_v12  ;;  %v879_v4 = vpack.c.bf16 %v867_v5, %v866_v62 }
 0x12d   : > { %4578 = vrcp.f32 %v808_v41  ;;  %v809_v15 = vadd.f32 1.0, %v4567_v55  ;;  %4143 = vmatpush3.bf16.msra.mxu0 %v4449_v57  ;;  %v878_v2 = vpack.c.bf16 %v865_v33, %v864_v34  ;;  %v569_v41 = vadd.f32 %v5170_v28, %v5214_v38 }
 0x12e   : > { %v4569_v7 = vpop.eup %4568  ;;  %4580 = vrcp.f32 %v811_v27  ;;  %4144 = vmatprep.subr.bf16.mxu0 %v4450_v24 }
 0x12f   : > { %v4571_v11 = vpop.eup %4570  ;;  %v854_v3 = vmul.f32 %v4569_v7, %v5148_v39  ;;  %4582 = vrcp.f32 %v809_v15  ;;  %4096 = vmatprep.mubr.bf16.mxu0 %v878_v2  ;;  %v553_v39 = vadd.f32 %v5170_v28, %v5186_v18  ;;  %v4470_v15 = vld [vmem:[%s6386_s6 + $0x70] sm:$0xff]   ;;  %v4471_v2 = vld [vmem:[%s6386_s6 + $0x78] sm:$0xff]  }
 0x130   : > { %v4573_v58 = vpop.eup %4572  ;;  %v852_v29 = vmul.f32 %v4571_v11, %v5153_v63  ;;  %4097 = vmatmul.mubr.bf16.gmra.mrb[20].mxu0 %v879_v4  ;;  %v4452_v63 = vld [vmem:[%s6384_s4 + $0x60] sm:$0xff]  }
 0x131   : > { %v4575_v57 = vpop.eup %4574  ;;  %v855_v60 = vmul.f32 %v4573_v58, %v5159_v6  ;;  %v870_v53 = vmul.f32 %v854_v3, %v558_v32  ;;  %4145 = vmatpush3.bf16.msra.mxu0 %v4450_v24  ;;  %v574_v6 = vadd.f32 %v5205_v9, %v5170_v28  ;;  %v5329_v11 = vld [vmem:[%s6384_s4 + $0x80] sm:$0xff]  }
 0x132   : > { %v853_v31 = vmul.f32 %v4575_v57, %v5163_v14  ;;  %v868_v52 = vmul.f32 %v852_v29, %v550_v0  ;;  %4146 = vmatprep.subr.bf16.mxu0 %v4451_v54  ;;  %v566_v14 = vadd.f32 %v5170_v28, %v5210_v26  ;;  %v577_v26 = vadd.f32 %v5212_v1, %v5170_v28  ;;  %v5275_v28 = vld [vmem:[%s4891_s19] sm:$0xff]  }
 0x133   : > { %v871_v62 = vmul.f32 %v855_v60, %v561_v35  ;;  %v4464_v1 = vld [vmem:[%s6386_s6 + $0x40] sm:$0xff]  }
 0x134   : > { %v869_v36 = vmul.f32 %v853_v31, %v553_v39  ;;  %4172 = vmatprep.subr.bf16.mxu1 %v4464_v1  ;;  %v4481_v39 = vld [vmem:[%s6382_s2 + $0x88] sm:$0xff]  }
 0x135   : > { %4147 = vmatpush3.bf16.msra.mxu0 %v4451_v54  ;;  %v881_v25 = vpack.c.bf16 %v871_v62, %v870_v53  ;;  %4173 = vmatpush3.bf16.msra.mxu1 %v4464_v1  ;;  %v4483_v62 = vld [vmem:[%s6382_s2 + $0x98] sm:$0xff]  }
 0x136   : > { %v4577_v61 = vpop.eup %4576  ;;  %v880_v10 = vpack.c.bf16 %v869_v36, %v868_v52  ;;  %4148 = vmatprep.subr.bf16.mxu0 %v4452_v63  ;;  %v4479_v52 = vld [vmem:[%s6382_s2 + $0x80] sm:$0xff]  }
 0x137   : > { %v4579_v34 = vpop.eup %4578  ;;  %v858_v18 = vmul.f32 %v4577_v61, %v5177_v40  ;;  %v4484_v36 = vld [vmem:[%s6382_s2 + $0xa0] sm:$0xff]   ;;  %v4487_v61 = vld [vmem:[%s6382_s2 + $0xb8] sm:$0xff]  }
 0x138   : > { %v4581_v13 = vpop.eup %4580  ;;  %v856_v56 = vmul.f32 %v4579_v34, %v5184_v8  ;;  %4100 = vmatprep.mubr.bf16.mxu0 %v880_v10  ;;  %v4454_v8 = vld [vmem:[%s6384_s4 + $0x70] sm:$0xff]  }
 0x139   : > { %v4583_v9 = vpop.eup %4582  ;;  %v859_v5 = vmul.f32 %v4581_v13, %v5190_v30  ;;  %v874_v24 = vmul.f32 %v858_v18, %v574_v6  ;;  %4101 = vmatmul.mubr.bf16.gmra.mrb[24].mxu0 %v881_v25  ;;  %v4485_v6 = vld [vmem:[%s6382_s2 + $0xa8] sm:$0xff]   ;;  %v4486_v25 = vld [vmem:[%s6382_s2 + $0xb0] sm:$0xff]  }
 0x13a   : > { %v857_v12 = vmul.f32 %v4583_v9, %v5196_v37  ;;  %v872_v40 = vmul.f32 %v856_v56, %v566_v14  ;;  %4149 = vmatpush3.bf16.msra.mxu0 %v4452_v63  ;;  %v4456_v37 = vld [vmem:[%s6384_s4 + $0x78] sm:$0xff]   ;;  %v4482_v63 = vld [vmem:[%s6382_s2 + $0x90] sm:$0xff]   ;;  %v5379_v18 = vld [vmem:[%s4891_s19 + $0x8] sm:$0xff]  }
 0x13b   : > { %v875_v33 = vmul.f32 %v859_v5, %v577_v26  ;;  %4150 = vmatprep.subr.bf16.mxu0 %v4453_v59  ;;  %v5385_v56 = vld [vmem:[%s4891_s19 + $0x10] sm:$0xff]   ;;  %v5399_v26 = vld [vmem:[%s4891_s19 + $0x18] sm:$0xff]  }
 0x13c   : > { %v873_v30 = vmul.f32 %v857_v12, %v569_v41  ;;  %v5405_v12 = vld [vmem:[%s4891_s19 + $0x20] sm:$0xff]   ;;  %v5423_v41 = vld [vmem:[%s4891_s19 + $0x30] sm:$0xff]  }
 0x13d   : > { %v883_v55 = vpack.c.bf16 %v875_v33, %v874_v24 }
 0x13e   : > { %4151 = vmatpush3.bf16.msra.mxu0 %v4453_v59  ;;  %v882_v27 = vpack.c.bf16 %v873_v30, %v872_v40  ;;  %v4817_v59 = vmov 1  }
 0x13f   : > { %4152 = vmatprep.subr.bf16.mxu0 %v4454_v8  ;;  %4411 = vset.pattern.permute.xlu1 %v4817_v59 }
 0x140   : > { %4104 = vmatprep.mubr.bf16.mxu0 %v882_v27  ;;  %1815 = vperm.xlu1 %4411, %v5038_v44   ;;  %v6416_v27 = vld [vmem:[#allocation5_spill] sm:$0xff] }
 0x141   : > { %4105 = vmatmul.mubr.bf16.gmra.mrb[28].mxu0 %v883_v55  ;;  %4410 = vset.pattern.permute.xlu0 %v4817_v59  ;;  %v6414_v55 = vld [vmem:[#allocation4_spill] sm:$0xff] }
 0x142   : > { %4153 = vmatpush3.bf16.msra.mxu0 %v4454_v8  ;;  %4156 = vmatprep.mubr.bf16.mxu0 %v5275_v28  ;;  %v5437_v8 = vld [vmem:[%s4891_s19 + $0x38] sm:$0xff]  }
 0x143   : > { %4154 = vmatprep.subr.bf16.mxu0 %v4456_v37  ;;  %1811 = vperm.xlu0 %4410, %v5030_v42  }
 0x144   : > { %1819 = vperm.xlu1 %4411, %v5033_v43  }
 0x146   : > { %4155 = vmatpush3.bf16.msra.mxu0 %v4456_v37  ;;  %v6417_v37 = vld [vmem:[#allocation6_spill] sm:$0xff] }
 0x147   : > { %4204 = vmatprep.subr.bf16.mxu0 %v4479_v52  ;;  %1823 = vperm.xlu0 %4410, %v5041_v45   ;;  %v5417_v45 = vld [vmem:[%s4891_s19 + $0x28] sm:$0xff]  }
 0x148   : > { %1827 = vperm.xlu1 %4411, %v5046_v46  }
 0x149   : > { %4157 = vmatmul.mubr.bf16.vlgmr.msra.gmra.mrb[32].mxu0 %v4928_v16  ;;  %v4465_v16 = vld [vmem:[%s6386_s6 + $0x48] sm:$0xff]  }
 0x14a   : > { %4160 = vmatprep.mubr.bf16.mxu0 %v4931_v17  ;;  %4174 = vmatprep.subr.bf16.mxu1 %v4465_v16  ;;  %v4466_v17 = vld [vmem:[%s6386_s6 + $0x50] sm:$0xff]  }
 0x14b   : > { %4175 = vmatpush3.bf16.msra.mxu1 %v4465_v16  ;;  %4205 = vmatpush3.bf16.msra.mxu0 %v4479_v52  ;;  %v6418_v16 = vld [vmem:[#allocation7_spill] sm:$0xff] }
 0x14c   : > { %4176 = vmatprep.subr.bf16.mxu1 %v4466_v17  ;;  %4206 = vmatprep.subr.bf16.mxu0 %v4481_v39 }
 0x14d   : > { %1831 = vperm.xlu0 %4410, %v5049_v47   ;;  %1835 = vperm.xlu1 %4411, %v5056_v48   ;;  %v6409_v47 = vld [vmem:[#allocation2_spill] sm:$0xff] }
 0x14f   : > { %4177 = vmatpush3.bf16.msra.mxu1 %v4466_v17  ;;  %4207 = vmatpush3.bf16.msra.mxu0 %v4481_v39 }
 0x150   : > { %4208 = vmatprep.subr.bf16.mxu0 %v4482_v63 }
 0x151   : > { %4161 = vmatmul.mubr.bf16.gmra.mrb[36].mxu0 %v4939_v19  ;;  %v4467_v19 = vld [vmem:[%s6386_s6 + $0x58] sm:$0xff]   ;;  %1839 = vperm.xlu0 %4410, %v5059_v49   ;;  %v6411_v49 = vld [vmem:[#allocation3_spill] sm:$0xff] }
 0x152   : > { %4164 = vmatprep.mubr.bf16.mxu0 %v4942_v20  ;;  %4178 = vmatprep.subr.bf16.mxu1 %v4467_v19  ;;  %v4468_v20 = vld [vmem:[%s6386_s6 + $0x60] sm:$0xff]  }
 0x153   : > { %4179 = vmatpush3.bf16.msra.mxu1 %v4467_v19  ;;  %4209 = vmatpush3.bf16.msra.mxu0 %v4482_v63 }
 0x154   : > { %4180 = vmatprep.subr.bf16.mxu1 %v4468_v20  ;;  %4210 = vmatprep.subr.bf16.mxu0 %v4483_v62 }
 0x155   : > { %1843 = vperm.xlu1 %4411, %v5064_v50   ;;  %1847 = vperm.xlu0 %4410, %v5067_v51   ;;  %v5449_v51 = vld [vmem:[%s6385_s5 + $0x1] ss:$0 sm:$0xff] }
 0x157   : > { %4181 = vmatpush3.bf16.msra.mxu1 %v4468_v20  ;;  %4211 = vmatpush3.bf16.msra.mxu0 %v4483_v62 }
 0x158   : > { %4212 = vmatprep.subr.bf16.mxu0 %v4484_v36 }
 0x159   : > { %4165 = vmatmul.mubr.bf16.gmra.mrb[40].mxu0 %v4949_v21  ;;  %v5301_v21 = vpop.f32.mrb[16].mxu1  ;;  %1851 = vperm.xlu1 %4411, %v6409_v47  }
 0x15a   : > { %4168 = vmatprep.mubr.bf16.mxu0 %v4952_v22  ;;  %v4469_v22 = vld [vmem:[%s6386_s6 + $0x68] sm:$0xff]   ;;  %1855 = vperm.xlu0 %4410, %v6411_v49  }
 0x15b   : > { %4182 = vmatprep.subr.bf16.mxu1 %v4469_v22  ;;  %4213 = vmatpush3.bf16.msra.mxu0 %v4484_v36 }
 0x15c   : > { %4183 = vmatpush3.bf16.msra.mxu1 %v4469_v22  ;;  %4214 = vmatprep.subr.bf16.mxu0 %v4485_v6 }
 0x15d   : > { %4184 = vmatprep.subr.bf16.mxu1 %v4470_v15  ;;  %1859 = vperm.xlu1 %4411, %v6414_v55  }
 0x15e   : > { %1863 = vperm.xlu0 %4410, %v6416_v27  }
 0x15f   : > { %4215 = vmatpush3.bf16.msra.mxu0 %v4485_v6 }
 0x160   : > { %4185 = vmatpush3.bf16.msra.mxu1 %v4470_v15  ;;  %4216 = vmatprep.subr.bf16.mxu0 %v4486_v25 }
 0x161   : > { %4169 = vmatmul.mubr.bf16.gmra.mrb[44].mxu0 %v4959_v23  ;;  %v5306_v23 = vpop.f32.mrb[17].mxu1  ;;  %4186 = vmatprep.subr.bf16.mxu1 %v4471_v2 }
 0x162   : > { %4220 = vmatprep.mubr.bf16.mxu0 %v5275_v28  ;;  %v5308_v38 = vpop.f32.mrb[18].mxu1  ;;  %1867 = vperm.xlu1 %4411, %v6417_v37  }
 0x163   : > { %v5310_v4 = vpop.f32.mrb[19].mxu1  ;;  %4217 = vmatpush3.bf16.msra.mxu0 %v4486_v25  ;;  %1871 = vperm.xlu0 %4410, %v6418_v16  }
 0x164   : > { %v5315_v32 = vpop.f32.mrb[20].mxu1  ;;  %4187 = vmatpush3.bf16.msra.mxu1 %v4471_v2  ;;  %4218 = vmatprep.subr.bf16.mxu0 %v4487_v61 }
 0x165   : > { %v5320_v7 = vpop.f32.mrb[21].mxu1  ;;  %4236 = vmatprep.subr.bf16.mxu1 %v5329_v11 }
 0x166   : > { %v5322_v0 = vpop.f32.mrb[22].mxu1 }
 0x167   : > { %v5324_v54 = vpop.f32.mrb[23].mxu1  ;;  %4219 = vmatpush3.bf16.msra.mxu0 %v4487_v61 }
 0x168   : > { %v5332_v3 = vpop.f32.mrb[24].mxu1 }
 0x169   : > { %v5334_v58 = vpop.f32.mrb[25].mxu1 }
 0x16a   : > { %v5336_v29 = vpop.f32.mrb[26].mxu1  ;;  %4221 = vmatmul.mubr.bf16.vlgmr.msra.gmra.mrb[48].mxu0 %v5379_v18 }
 0x16b   : > { %v5338_v57 = vpop.f32.mrb[27].mxu1  ;;  %4224 = vmatprep.mubr.bf16.mxu0 %v5385_v56 }
 0x16c   : > { %v5340_v60 = vpop.f32.mrb[28].mxu1 }
 0x16d   : > { %v5342_v53 = vpop.f32.mrb[29].mxu1 }
 0x16e   : > { %v5344_v35 = vpop.f32.mrb[30].mxu1 }
 0x16f   : > { %v5346_v31 = vpop.f32.mrb[31].mxu1 }
 0x172   : > { %4225 = vmatmul.mubr.bf16.gmra.mrb[52].mxu0 %v5399_v26 }
 0x173   : > { %4228 = vmatprep.mubr.bf16.mxu0 %v5405_v12 }
 0x17a   : > { %4229 = vmatmul.mubr.bf16.gmra.mrb[56].mxu0 %v5417_v45 }
 0x17b   : > { %4232 = vmatprep.mubr.bf16.mxu0 %v5423_v41 }
 0x182   : > { %4233 = vmatmul.mubr.bf16.gmra.mrb[60].mxu0 %v5437_v8 }
 0x1fb   : > { %v5372_v14 = vpop.f32.mrb[16].mxu0 }
 0x1fc   : > { %v5374_v10 = vpop.f32.mrb[17].mxu0 }
 0x1fd   : > { %v5376_v34 = vpop.f32.mrb[18].mxu0 }
 0x1fe   : > { %v5382_v13 = vpop.f32.mrb[19].mxu0 }
 0x203   : > { %v5391_v9 = vpop.f32.mrb[20].mxu0 }
 0x204   : > { %v5393_v5 = vpop.f32.mrb[21].mxu0 }
 0x205   : > { %6402 = vst [vmem:[#allocation8_spill] sm:$0xff] %v5393_v5  ;;  %v5396_v24 = vpop.f32.mrb[22].mxu0 }
 0x206   : > { %6403 = vst [vmem:[#allocation9_spill] sm:$0xff] %v5396_v24  ;;  %v5402_v44 = vpop.f32.mrb[23].mxu0 }
 0x207   : > { %6404 = vst [vmem:[#allocation10_spill] sm:$0xff] %v5402_v44 }
 0x20c   : > { %v5411_v42 = vpop.f32.mrb[24].mxu0 }
 0x20d   : > { %6405 = vst [vmem:[#allocation11_spill] sm:$0xff] %v5411_v42  ;;  %v5414_v43 = vpop.f32.mrb[25].mxu0 }
 0x20e   : > { %6406 = vst [vmem:[#allocation12_spill] sm:$0xff] %v5414_v43  ;;  %v5420_v40 = vpop.f32.mrb[26].mxu0 }
 0x20f   : > { %6407 = vst [vmem:[#allocation13_spill] sm:$0xff] %v5420_v40  ;;  %v5427_v46 = vpop.f32.mrb[27].mxu0 }
 0x210   : > { %6408 = vst [vmem:[#allocation14_spill] sm:$0xff] %v5427_v46 }
 0x214   : > { %v5431_v48 = vpop.f32.mrb[28].mxu0 }
 0x215   : > { %6410 = vst [vmem:[#allocation2_spill] sm:$0xff] %v5431_v48  ;;  %v5434_v33 = vpop.f32.mrb[29].mxu0 }
 0x216   : > { %6412 = vst [vmem:[#allocation3_spill] sm:$0xff] %v5434_v33  ;;  %v5440_v30 = vpop.f32.mrb[30].mxu0 }
 0x217   : > { %6413 = vst [vmem:[#allocation15_spill] sm:$0xff] %v5440_v30  ;;  %v5443_v50 = vpop.f32.mrb[31].mxu0 }
 0x218   : > { %6415 = vst [vmem:[#allocation4_spill] sm:$0xff] %v5443_v50 }
 0x21c   : > { %v4158_v1 = vpop.f32.mrb[32].mxu0 }
 0x21d   : > { %v5454_v17 = vadd.f32 %v4158_v1, %v5449_v51  ;;  %v1441_v19 = vpop.f32.mrb[33].mxu0 }
 0x21e   : > { %v5457_v20 = vadd.f32 %v5449_v51, %v1441_v19  ;;  %v4159_v22 = vpop.f32.mrb[34].mxu0 }
 0x21f   : > { %v3590_v15 = vmul.f32 -1.442695, %v5454_v17  ;;  %v5461_v2 = vadd.f32 %v4159_v22, %v5449_v51  ;;  %v1444_v52 = vpop.f32.mrb[35].mxu0 }
 0x220   : > { %v3588_v39 = vmul.f32 -1.442695, %v5457_v20  ;;  %v5465_v63 = vadd.f32 %v5449_v51, %v1444_v52 }
 0x221   : > { %4584 = vpow2.f32 %v3590_v15  ;;  %v3591_v62 = vmul.f32 -1.442695, %v5461_v2 }
 0x222   : > { %4586 = vpow2.f32 %v3588_v39  ;;  %v3589_v36 = vmul.f32 -1.442695, %v5465_v63 }
 0x223   : > { %4588 = vpow2.f32 %v3591_v62 }
 0x224   : > { %4590 = vpow2.f32 %v3589_v36  ;;  %v4162_v6 = vpop.f32.mrb[36].mxu0 }
 0x225   : > { %v5470_v25 = vadd.f32 %v4162_v6, %v5449_v51  ;;  %v1457_v61 = vpop.f32.mrb[37].mxu0 }
 0x226   : > { %v5473_v59 = vadd.f32 %v5449_v51, %v1457_v61  ;;  %v4163_v47 = vpop.f32.mrb[38].mxu0 }
 0x227   : > { %v3594_v49 = vmul.f32 -1.442695, %v5470_v25  ;;  %v5477_v55 = vadd.f32 %v4163_v47, %v5449_v51  ;;  %v1460_v27 = vpop.f32.mrb[39].mxu0 }
 0x228   : > { %v3592_v37 = vmul.f32 -1.442695, %v5473_v59  ;;  %v5481_v1 = vadd.f32 %v5449_v51, %v1460_v27 }
 0x229   : > { %4592 = vpow2.f32 %v3594_v49  ;;  %v3595_v16 = vmul.f32 -1.442695, %v5477_v55 }
 0x22a   : > { %4594 = vpow2.f32 %v3592_v37  ;;  %v3593_v19 = vmul.f32 -1.442695, %v5481_v1 }
 0x22b   : > { %v4585_v22 = vpop.eup %4584  ;;  %4596 = vpow2.f32 %v3595_v16 }
 0x22c   : > { %v4587_v15 = vpop.eup %4586  ;;  %v1554_v52 = vadd.f32 1.0, %v4585_v22  ;;  %4598 = vpow2.f32 %v3593_v19  ;;  %v4166_v39 = vpop.f32.mrb[40].mxu0 }
 0x22d   : > { %v4589_v62 = vpop.eup %4588  ;;  %v1552_v36 = vadd.f32 1.0, %v4587_v15  ;;  %v5486_v6 = vadd.f32 %v4166_v39, %v5449_v51  ;;  %v1473_v61 = vpop.f32.mrb[41].mxu0 }
 0x22e   : > { %v4591_v47 = vpop.eup %4590  ;;  %4600 = vrcp.f32 %v1554_v52  ;;  %v1555_v49 = vadd.f32 1.0, %v4589_v62  ;;  %v5489_v27 = vadd.f32 %v5449_v51, %v1473_v61  ;;  %v4167_v37 = vpop.f32.mrb[42].mxu0  ;;  %v5504_v61 = vld [vmem:[%s6383_s3 + $0x1] ss:$0 sm:$0xff] }
 0x22f   : > { %4602 = vrcp.f32 %v1552_v36  ;;  %v1553_v50 = vadd.f32 1.0, %v4591_v47  ;;  %v3598_v16 = vmul.f32 -1.442695, %v5486_v6  ;;  %v5493_v19 = vadd.f32 %v4167_v37, %v5449_v51  ;;  %v1476_v22 = vpop.f32.mrb[43].mxu0 }
 0x230   : > { %4604 = vrcp.f32 %v1555_v49  ;;  %v3596_v15 = vmul.f32 -1.442695, %v5489_v27  ;;  %v5497_v39 = vadd.f32 %v5449_v51, %v1476_v22 }
 0x231   : > { %4606 = vrcp.f32 %v1553_v50  ;;  %v3599_v52 = vmul.f32 -1.442695, %v5493_v19 }
 0x232   : > { %4608 = vpow2.f32 %v3598_v16  ;;  %v3597_v62 = vmul.f32 -1.442695, %v5497_v39 }
 0x233   : > { %v4593_v36 = vpop.eup %4592  ;;  %4610 = vpow2.f32 %v3596_v15  ;;  %v1280_v15 = vadd.f32 %v5301_v21, %v5504_v61 }
 0x234   : > { %v4595_v47 = vpop.eup %4594  ;;  %v1558_v49 = vadd.f32 1.0, %v4593_v36  ;;  %4612 = vpow2.f32 %v3599_v52  ;;  %v4170_v37 = vpop.f32.mrb[44].mxu0 }
 0x235   : > { %v4597_v30 = vpop.eup %4596  ;;  %v1556_v22 = vadd.f32 1.0, %v4595_v47  ;;  %4614 = vpow2.f32 %v3597_v62  ;;  %v5507_v50 = vadd.f32 %v4170_v37, %v5449_v51  ;;  %v1489_v16 = vpop.f32.mrb[45].mxu0 }
 0x236   : > { %v4599_v33 = vpop.eup %4598  ;;  %4616 = vrcp.f32 %v1558_v49  ;;  %v1559_v48 = vadd.f32 1.0, %v4597_v30  ;;  %v5512_v46 = vadd.f32 %v5449_v51, %v1489_v16  ;;  %v4171_v40 = vpop.f32.mrb[46].mxu0  ;;  %v1272_v30 = vadd.f32 %v5504_v61, %v5306_v23 }
 0x237   : > { %4618 = vrcp.f32 %v1556_v22  ;;  %v1557_v52 = vadd.f32 1.0, %v4599_v33  ;;  %v3602_v36 = vmul.f32 -1.442695, %v5507_v50  ;;  %v5516_v62 = vadd.f32 %v4171_v40, %v5449_v51  ;;  %v1492_v47 = vpop.f32.mrb[47].mxu0 }
 0x238   : > { %v4601_v37 = vpop.eup %4600  ;;  %4620 = vrcp.f32 %v1559_v48  ;;  %v3600_v49 = vmul.f32 -1.442695, %v5512_v46  ;;  %v5522_v21 = vadd.f32 %v5449_v51, %v1492_v47  ;;  %v1283_v23 = vadd.f32 %v5308_v38, %v5504_v61 }
 0x239   : > { %v4603_v16 = vpop.eup %4602  ;;  %v1602_v22 = vmul.f32 %v4601_v37, %v5454_v17  ;;  %4622 = vrcp.f32 %v1557_v52  ;;  %v3603_v33 = vmul.f32 -1.442695, %v5516_v62  ;;  %v1275_v47 = vadd.f32 %v5504_v61, %v5310_v4 }
 0x23a   : > { %v4605_v43 = vpop.eup %4604  ;;  %v1600_v40 = vmul.f32 %v4603_v16, %v5457_v20  ;;  %4624 = vpow2.f32 %v3602_v36  ;;  %v3601_v48 = vmul.f32 -1.442695, %v5522_v21  ;;  %v1296_v38 = vadd.f32 %v5315_v32, %v5504_v61 }
 0x23b   : > { %v4607_v42 = vpop.eup %4606  ;;  %v1603_v44 = vmul.f32 %v4605_v43, %v5461_v2  ;;  %v1618_v24 = vmul.f32 %v1602_v22, %v1280_v15  ;;  %4626 = vpow2.f32 %v3600_v49  ;;  %v1288_v4 = vadd.f32 %v5504_v61, %v5320_v7 }
 0x23c   : > { %v4609_v51 = vpop.eup %4608  ;;  %v1601_v17 = vmul.f32 %v4607_v42, %v5465_v63  ;;  %v1616_v52 = vmul.f32 %v1600_v40, %v1272_v30  ;;  %4628 = vpow2.f32 %v3603_v33  ;;  %v4473_v33 = vld [vmem:[%s6384_s4 + $0x88] sm:$0xff]   ;;  %v1299_v7 = vadd.f32 %v5322_v0, %v5504_v61 }
 0x23d   : > { %v4611_v20 = vpop.eup %4610  ;;  %v1562_v36 = vadd.f32 1.0, %v4609_v51  ;;  %v1619_v37 = vmul.f32 %v1603_v44, %v1283_v23  ;;  %4630 = vpow2.f32 %v3601_v48 }
 0x23e   : > { %v4613_v16 = vpop.eup %4612  ;;  %v1560_v5 = vadd.f32 1.0, %v4611_v20  ;;  %v1617_v43 = vmul.f32 %v1601_v17, %v1275_v47  ;;  %v1291_v17 = vadd.f32 %v5504_v61, %v5324_v54  ;;  %v1312_v54 = vadd.f32 %v5332_v3, %v5504_v61 }
 0x23f   : > { %v4615_v2 = vpop.eup %4614  ;;  %4632 = vrcp.f32 %v1562_v36  ;;  %v1563_v15 = vadd.f32 1.0, %v4613_v16  ;;  %v1633_v49 = vpack.c.bf16 %v1619_v37, %v1618_v24 }
 0x240   : > { %v4617_v42 = vpop.eup %4616  ;;  %4634 = vrcp.f32 %v1560_v5  ;;  %v1561_v63 = vadd.f32 1.0, %v4615_v2  ;;  %v1632_v30 = vpack.c.bf16 %v1617_v43, %v1616_v52 }
 0x241   : > { %v4619_v22 = vpop.eup %4618  ;;  %v1606_v44 = vmul.f32 %v4617_v42, %v5470_v25  ;;  %4636 = vrcp.f32 %v1563_v15  ;;  %v1304_v15 = vadd.f32 %v5504_v61, %v5334_v58  ;;  %v1315_v58 = vadd.f32 %v5336_v29, %v5504_v61 }
 0x242   : > { %v4621_v40 = vpop.eup %4620  ;;  %v1604_v24 = vmul.f32 %v4619_v22, %v5473_v59  ;;  %4638 = vrcp.f32 %v1561_v63  ;;  %4188 = vmatprep.mubr.bf16.mxu1 %v1632_v30 }
 0x243   : > { %v4623_v32 = vpop.eup %4622  ;;  %v1607_v5 = vmul.f32 %v4621_v40, %v5477_v55  ;;  %v1622_v48 = vmul.f32 %v1606_v44, %v1296_v38  ;;  %4189 = vmatmul.mubr.bf16.vlgmr.msra.gmra.mrb[32].mxu1 %v1633_v49  ;;  %v4474_v55 = vld [vmem:[%s6384_s4 + $0x90] sm:$0xff]   ;;  %v4475_v49 = vld [vmem:[%s6384_s4 + $0x98] sm:$0xff]  }
 0x244   : > { %v4625_v23 = vpop.eup %4624  ;;  %v1605_v25 = vmul.f32 %v4623_v32, %v5481_v1  ;;  %v1620_v51 = vmul.f32 %v1604_v24, %v1288_v4  ;;  %4237 = vmatpush3.bf16.msra.mxu1 %v5329_v11 }
 0x245   : > { %v4627_v59 = vpop.eup %4626  ;;  %v1566_v52 = vadd.f32 1.0, %v4625_v23  ;;  %v1623_v47 = vmul.f32 %v1607_v5, %v1299_v7  ;;  %4238 = vmatprep.subr.bf16.mxu1 %v4473_v33  ;;  %v4477_v7 = vld [vmem:[%s6384_s4 + $0xa8] sm:$0xff]  }
 0x246   : > { %v4629_v20 = vpop.eup %4628  ;;  %v1564_v0 = vadd.f32 1.0, %v4627_v59  ;;  %v1621_v36 = vmul.f32 %v1605_v25, %v1291_v17 }
 0x247   : > { %v4631_v37 = vpop.eup %4630  ;;  %4640 = vrcp.f32 %v1566_v52  ;;  %v1567_v1 = vadd.f32 1.0, %v4629_v20  ;;  %v1635_v16 = vpack.c.bf16 %v1623_v47, %v1622_v48 }
 0x248   : > { %4642 = vrcp.f32 %v1564_v0  ;;  %v1565_v43 = vadd.f32 1.0, %v4631_v37  ;;  %4239 = vmatpush3.bf16.msra.mxu1 %v4473_v33  ;;  %v1634_v11 = vpack.c.bf16 %v1621_v36, %v1620_v51  ;;  %v4492_v0 = vld [vmem:[%s6386_s6 + $0xa0] sm:$0xff]   ;;  %v5616_v36 = vpop.f32.mrb[48].mxu0  ;;  %v4493_v37 = vld [vmem:[%s6386_s6 + $0xa8] sm:$0xff]  }
 0x249   : > { %v4633_v2 = vpop.eup %4632  ;;  %4644 = vrcp.f32 %v1567_v1  ;;  %4240 = vmatprep.subr.bf16.mxu1 %v4474_v55  ;;  %v5621_v1 = vpop.f32.mrb[49].mxu0 }
 0x24a   : > { %v4635_v38 = vpop.eup %4634  ;;  %v1610_v42 = vmul.f32 %v4633_v2, %v5486_v6  ;;  %4646 = vrcp.f32 %v1565_v43  ;;  %4192 = vmatprep.mubr.bf16.mxu1 %v1634_v11  ;;  %v1307_v6 = vadd.f32 %v5504_v61, %v5338_v57  ;;  %v5630_v11 = vpop.permute.xlu1 %1064 }
 0x24b   : > { %v4637_v63 = vpop.eup %4636  ;;  %v1608_v3 = vmul.f32 %v4635_v38, %v5489_v27  ;;  %4193 = vmatmul.mubr.bf16.gmra.mrb[36].mxu1 %v1635_v16  ;;  %v4476_v27 = vld [vmem:[%s6384_s4 + $0xa0] sm:$0xff]   ;;  %v5623_v16 = vpop.f32.mrb[50].mxu0 }
 0x24c   : > { %v4639_v4 = vpop.eup %4638  ;;  %v1611_v30 = vmul.f32 %v4637_v63, %v5493_v19  ;;  %v1626_v22 = vmul.f32 %v1610_v42, %v1312_v54  ;;  %4241 = vmatpush3.bf16.msra.mxu1 %v4474_v55  ;;  %v1328_v19 = vadd.f32 %v5340_v60, %v5504_v61  ;;  %v5625_v43 = vpop.f32.mrb[51].mxu0  ;;  %v4494_v54 = vld [vmem:[%s6386_s6 + $0xb0] sm:$0xff]  }
 0x24d   : > { %v1609_v44 = vmul.f32 %v4639_v4, %v5497_v39  ;;  %v1624_v33 = vmul.f32 %v1608_v3, %v1304_v15  ;;  %4242 = vmatprep.subr.bf16.mxu1 %v4475_v49  ;;  %v1320_v39 = vadd.f32 %v5504_v61, %v5342_v53  ;;  %v1331_v53 = vadd.f32 %v5344_v35, %v5504_v61  ;;  %v4480_v35 = vld [vmem:[%s6384_s4 + $0xb8] sm:$0xff]   ;;  %v5632_v2 = vpop.permute.xlu0 %1054  ;;  %v5634_v15 = vpop.f32.mrb[52].mxu0  ;;  %v5650_v4 = vld [vmem:[%s6384_s4 + $0xc0] sm:$0xff]  }
 0x24e   : > { %v1627_v40 = vmul.f32 %v1611_v30, %v1315_v58  ;;  %v5639_v38 = vpop.f32.mrb[53].mxu0  ;;  %v5645_v3 = vpop.permute.xlu1 %1069 }
 0x24f   : > { %v1625_v24 = vmul.f32 %v1609_v44, %v1307_v6  ;;  %v5641_v42 = vpop.f32.mrb[54].mxu0 }
 0x250   : > { %4243 = vmatpush3.bf16.msra.mxu1 %v4475_v49  ;;  %v1637_v32 = vpack.c.bf16 %v1627_v40, %v1626_v22  ;;  %v4495_v49 = vld [vmem:[%s6386_s6 + $0xb8] sm:$0xff]   ;;  %v5643_v63 = vpop.f32.mrb[55].mxu0 }
 0x251   : > { %v4641_v29 = vpop.eup %4640  ;;  %v1636_v5 = vpack.c.bf16 %v1625_v24, %v1624_v33  ;;  %4244 = vmatprep.subr.bf16.mxu1 %v4476_v27  ;;  %v5652_v30 = vpop.permute.xlu0 %1059 }
 0x252   : > { %v4643_v48 = vpop.eup %4642  ;;  %v1614_v57 = vmul.f32 %v4641_v29, %v5507_v50  ;;  %v1323_v50 = vadd.f32 %v5504_v61, %v5346_v31  ;;  %v4488_v31 = vld [vmem:[%s6386_s6 + $0x80] sm:$0xff]   ;;  %v4489_v61 = vld [vmem:[%s6386_s6 + $0x88] sm:$0xff]   ;;  %v5655_v22 = vpop.f32.mrb[56].mxu0 }
 0x253   : > { %v4645_v23 = vpop.eup %4644  ;;  %v1612_v25 = vmul.f32 %v4643_v48, %v5512_v46  ;;  %4196 = vmatprep.mubr.bf16.mxu1 %v1636_v5  ;;  %v4478_v46 = vld [vmem:[%s6384_s4 + $0xb0] sm:$0xff]   ;;  %4268 = vmatprep.subr.bf16.mxu0 %v4488_v31  ;;  %v5657_v58 = vpop.f32.mrb[57].mxu0 }
 0x254   : > { %v4647_v60 = vpop.eup %4646  ;;  %v1615_v51 = vmul.f32 %v4645_v23, %v5516_v62  ;;  %v1630_v17 = vmul.f32 %v1614_v57, %v1328_v19  ;;  %4197 = vmatmul.mubr.bf16.gmra.mrb[40].mxu1 %v1637_v32  ;;  %4269 = vmatpush3.bf16.msra.mxu0 %v4488_v31  ;;  %v5659_v44 = vpop.permute.xlu1 %1079  ;;  %v4511_v31 = vld [vmem:[%s6382_s2 + $0xf8] sm:$0xff]  }
 0x255   : > { %v1613_v59 = vmul.f32 %v4647_v60, %v5522_v21  ;;  %v1628_v52 = vmul.f32 %v1612_v25, %v1320_v39  ;;  %4245 = vmatpush3.bf16.msra.mxu1 %v4476_v27  ;;  %4270 = vmatprep.subr.bf16.mxu0 %v4489_v61  ;;  %v4490_v21 = vld [vmem:[%s6386_s6 + $0x90] sm:$0xff]   ;;  %v5661_v33 = vpop.f32.mrb[58].mxu0  ;;  %v5665_v27 = vpop.permute.xlu0 %1074  ;;  %v4505_v25 = vld [vmem:[%s6382_s2 + $0xc8] sm:$0xff]  }
 0x256   : > { %v1631_v47 = vmul.f32 %v1615_v51, %v1331_v53  ;;  %4246 = vmatprep.subr.bf16.mxu1 %v4477_v7  ;;  %v5663_v6 = vpop.f32.mrb[59].mxu0  ;;  %v4507_v53 = vld [vmem:[%s6382_s2 + $0xd8] sm:$0xff]  }
 0x257   : > { %v1629_v55 = vmul.f32 %v1613_v59, %v1323_v50  ;;  %v5669_v24 = vpop.f32.mrb[60].mxu0 }
 0x258   : > { %v1639_v62 = vpack.c.bf16 %v1631_v47, %v1630_v17  ;;  %4271 = vmatpush3.bf16.msra.mxu0 %v4489_v61  ;;  %v5667_v40 = vpop.permute.xlu1 %1089  ;;  %v5671_v19 = vpop.f32.mrb[61].mxu0  ;;  %v4506_v17 = vld [vmem:[%s6382_s2 + $0xd0] sm:$0xff]   ;;  %v4508_v47 = vld [vmem:[%s6382_s2 + $0xe0] sm:$0xff]  }
 0x259   : > { %4247 = vmatpush3.bf16.msra.mxu1 %v4477_v7  ;;  %v1638_v20 = vpack.c.bf16 %v1629_v55, %v1628_v52  ;;  %4272 = vmatprep.subr.bf16.mxu0 %v4490_v21  ;;  %v5673_v32 = vpop.permute.xlu0 %1084  ;;  %v5675_v29 = vpop.f32.mrb[62].mxu0  ;;  %v4503_v7 = vld [vmem:[%s6382_s2 + $0xc0] sm:$0xff]   ;;  %v4509_v55 = vld [vmem:[%s6382_s2 + $0xe8] sm:$0xff]  }
 0x25a   : > { %4248 = vmatprep.subr.bf16.mxu1 %v4478_v46  ;;  %6419 = vst [vmem:[#allocation5_spill] sm:$0xff] %v5675_v29  ;;  %v5677_v39 = vpop.f32.mrb[63].mxu0  ;;  %v5748_v29 = vld [vmem:[%s5026_s24] sm:$0xff] }
 0x25b   : > { %4200 = vmatprep.mubr.bf16.mxu1 %v1638_v20  ;;  %6420 = vst [vmem:[#allocation6_spill] sm:$0xff] %v5677_v39  ;;  %6421 = vst [vmem:[#allocation7_spill] sm:$0xff] %v5748_v29 }
 0x25c   : > { %4201 = vmatmul.mubr.bf16.gmra.mrb[44].mxu1 %v1639_v62  ;;  %4273 = vmatpush3.bf16.msra.mxu0 %v4490_v21  ;;  %v5679_v5 = vpop.permute.xlu1 %1099  ;;  %v5724_v21 = vld [vmem:[%s6387_s7] ss:$0 sm:$0xff] }
 0x25d   : > { %4249 = vmatpush3.bf16.msra.mxu1 %v4478_v46  ;;  %4252 = vmatprep.mubr.bf16.mxu1 %v5275_v28  ;;  %v5681_v48 = vpop.permute.xlu0 %1094 }
 0x25e   : > { %4250 = vmatprep.subr.bf16.mxu1 %v4480_v35 }
 0x260   : > { %v5683_v57 = vpop.permute.xlu1 %1109 }
 0x261   : > { %4251 = vmatpush3.bf16.msra.mxu1 %v4480_v35  ;;  %v5688_v23 = vpop.permute.xlu0 %1104  ;;  %v4510_v35 = vld [vmem:[%s6382_s2 + $0xf0] sm:$0xff]  }
 0x262   : > { %4300 = vmatprep.subr.bf16.mxu1 %v4503_v7 }
 0x264   : > { %4253 = vmatmul.mubr.bf16.vlgmr.msra.gmra.mrb[48].mxu1 %v5379_v18  ;;  %v5693_v60 = vpop.permute.xlu1 %1119 }
 0x265   : > { %4256 = vmatprep.mubr.bf16.mxu1 %v5385_v56  ;;  %4301 = vmatpush3.bf16.msra.mxu1 %v4503_v7  ;;  %v5695_v51 = vpop.permute.xlu0 %1114  ;;  %v1001_v7 = vadd.f32 %v5376_v34, %v5724_v21 }
 0x266   : > { %4302 = vmatprep.subr.bf16.mxu1 %v4505_v25 }
 0x268   : > { %v5703_v59 = vpop.permute.xlu1 %1129 }
 0x269   : > { %4303 = vmatpush3.bf16.msra.mxu1 %v4505_v25  ;;  %v5705_v52 = vpop.permute.xlu0 %1124 }
 0x26a   : > { %4304 = vmatprep.subr.bf16.mxu1 %v4506_v17 }
 0x26c   : > { %4257 = vmatmul.mubr.bf16.gmra.mrb[52].mxu1 %v5399_v26  ;;  %v1816_v50 = vpop.permute.xlu1 %1815 }
 0x26d   : > { %4260 = vmatprep.mubr.bf16.mxu1 %v5405_v12  ;;  %4305 = vmatpush3.bf16.msra.mxu1 %v4506_v17  ;;  %v1812_v46 = vpop.permute.xlu0 %1811 }
 0x26e   : > { %4306 = vmatprep.subr.bf16.mxu1 %v4507_v53 }
 0x270   : > { %v1820_v62 = vpop.permute.xlu1 %1819 }
 0x271   : > { %4307 = vmatpush3.bf16.msra.mxu1 %v4507_v53  ;;  %v1824_v20 = vpop.permute.xlu0 %1823 }
 0x272   : > { %4308 = vmatprep.subr.bf16.mxu1 %v4508_v47 }
 0x274   : > { %4261 = vmatmul.mubr.bf16.gmra.mrb[56].mxu1 %v5417_v45  ;;  %v5719_v61 = vpop.permute.xlu1 %1827 }
 0x275   : > { %4264 = vmatprep.mubr.bf16.mxu1 %v5423_v41  ;;  %4309 = vmatpush3.bf16.msra.mxu1 %v4508_v47  ;;  %v993_v47 = vadd.f32 %v5724_v21, %v5382_v13 }
 0x276   : > { %4310 = vmatprep.subr.bf16.mxu1 %v4509_v55 }
 0x278   : > { %v1836_v53 = vpop.permute.xlu1 %1835 }
 0x279   : > { %4311 = vmatpush3.bf16.msra.mxu1 %v4509_v55 }
 0x27a   : > { %4312 = vmatprep.subr.bf16.mxu1 %v4510_v35 }
 0x27c   : > { %4265 = vmatmul.mubr.bf16.gmra.mrb[60].mxu1 %v5437_v8 }
 0x27d   : > { %4316 = vmatprep.mubr.bf16.mxu1 %v5275_v28  ;;  %v4491_v28 = vld [vmem:[%s6386_s6 + $0x98] sm:$0xff]   ;;  %4313 = vmatpush3.bf16.msra.mxu1 %v4510_v35 }
 0x27e   : > { %4274 = vmatprep.subr.bf16.mxu0 %v4491_v28  ;;  %4314 = vmatprep.subr.bf16.mxu1 %v4511_v31 }
 0x27f   : > { %4275 = vmatpush3.bf16.msra.mxu0 %v4491_v28  ;;  %v5726_v28 = vpop.permute.xlu0 %1831 }
 0x280   : > { %4276 = vmatprep.subr.bf16.mxu0 %v4492_v0 }
 0x281   : > { %4315 = vmatpush3.bf16.msra.mxu1 %v4511_v31 }
 0x283   : > { %4277 = vmatpush3.bf16.msra.mxu0 %v4492_v0  ;;  %v5731_v0 = vld [vmem:[%s6387_s7 + $0x1] ss:$0 sm:$0xff] }
 0x284   : > { %4278 = vmatprep.subr.bf16.mxu0 %v4493_v37  ;;  %4317 = vmatmul.mubr.bf16.vlgmr.msra.gmra.mrb[64].mxu1 %v5379_v18 }
 0x285   : > { %4320 = vmatprep.mubr.bf16.mxu1 %v5385_v56  ;;  %v1133_v56 = vmul.f32 %v5652_v30, %v993_v47  ;;  %v6427_v30 = vld [vmem:[#allocation9_spill] sm:$0xff] }
 0x287   : > { %4279 = vmatpush3.bf16.msra.mxu0 %v4493_v37  ;;  %v998_v37 = vadd.f32 %v5372_v14, %v5724_v21  ;;  %v4818_v14 = vmov 2  }
 0x288   : > { %4280 = vmatprep.subr.bf16.mxu0 %v4494_v54  ;;  %4412 = vset.pattern.permute.xlu1 %v4818_v14 }
 0x289   : > { %2553 = vperm.xlu1 %4412, %v5748_v29   ;;  %4413 = vset.pattern.permute.xlu0 %v4818_v14 }
 0x28b   : > { %4281 = vmatpush3.bf16.msra.mxu0 %v4494_v54  ;;  %v990_v54 = vadd.f32 %v5724_v21, %v5374_v10  ;;  %v1134_v10 = vmul.f32 %v5630_v11, %v998_v37  ;;  %v1135_v11 = vmul.f32 %v5645_v3, %v1001_v7  ;;  %v5768_v3 = vld [vmem:[%s5026_s24 + $0x10] sm:$0xff] }
 0x28c   : > { %4282 = vmatprep.subr.bf16.mxu0 %v4495_v49  ;;  %4321 = vmatmul.mubr.bf16.gmra.mrb[68].mxu1 %v5399_v26 }
 0x28d   : > { %v1132_v13 = vmul.f32 %v5632_v2, %v990_v54  ;;  %v1014_v2 = vadd.f32 %v5391_v9, %v5724_v21  ;;  %2561 = vperm.xlu1 %4412, %v5768_v3   ;;  %4324 = vmatprep.mubr.bf16.mxu1 %v5405_v12 }
 0x28f   : > { %4283 = vmatpush3.bf16.msra.mxu0 %v4495_v49 }
 0x290   : > { %4332 = vmatprep.subr.bf16.mxu0 %v5650_v4 }
 0x294   : > { %4325 = vmatmul.mubr.bf16.gmra.mrb[72].mxu1 %v5417_v45 }
 0x295   : > { %4328 = vmatprep.mubr.bf16.mxu1 %v5423_v41 }
 0x29c   : > { %4329 = vmatmul.mubr.bf16.gmra.mrb[76].mxu1 %v5437_v8 }
 0x316   : > { %v4190_v49 = vpop.f32.mrb[32].mxu1 }
 0x317   : > { %v1756_v25 = vadd.f32 %v4190_v49, %v5731_v0  ;;  %v1747_v17 = vpop.f32.mrb[33].mxu1  ;;  %v1840_v49 = vpop.permute.xlu0 %1839 }
 0x318   : > { %v1748_v55 = vadd.f32 %v5731_v0, %v1747_v17  ;;  %v4191_v35 = vpop.f32.mrb[34].mxu1 }
 0x319   : > { %v1876_v31 = vmul.f32 %v1820_v62, %v1756_v25  ;;  %v1759_v34 = vadd.f32 %v4191_v35, %v5731_v0  ;;  %v1750_v39 = vpop.f32.mrb[35].mxu1  ;;  %v5757_v25 = vld [vmem:[%s5026_s24 + $0x8] sm:$0xff] }
 0x31a   : > { %v1874_v18 = vmul.f32 %v1812_v46, %v1748_v55  ;;  %v1751_v17 = vadd.f32 %v5731_v0, %v1750_v39  ;;  %2557 = vperm.xlu0 %4413, %v5757_v25   ;;  %v1844_v46 = vpop.permute.xlu1 %1843 }
 0x31b   : > { %v5754_v62 = vadd.f32 %v1876_v31, %v1134_v10  ;;  %v1877_v37 = vmul.f32 %v1824_v20, %v1759_v34  ;;  %v6425_v20 = vld [vmem:[#allocation8_spill] sm:$0xff]  ;;  %v1848_v14 = vpop.permute.xlu0 %1847  ;;  %v5779_v10 = vld [vmem:[%s5026_s24 + $0x20] sm:$0xff] }
 0x31c   : > { %v5761_v35 = vadd.f32 %v1874_v18, %v1132_v13  ;;  %v1875_v29 = vmul.f32 %v1816_v50, %v1751_v17  ;;  %v1006_v54 = vadd.f32 %v5724_v21, %v6425_v20  ;;  %v1017_v50 = vadd.f32 %v6427_v30, %v5724_v21  ;;  %v6428_v31 = vld [vmem:[#allocation10_spill] sm:$0xff] }
 0x31d   : > { %6422 = vst [vmem:[#allocation16_spill] sm:$0xff] %v5754_v62  ;;  %v5765_v39 = vadd.f32 %v1877_v37, %v1135_v11  ;;  %v1009_v34 = vadd.f32 %v5724_v21, %v6428_v31  ;;  %v1138_v18 = vmul.f32 %v5673_v32, %v1014_v2  ;;  %v5810_v31 = vld [vmem:[%s5026_s24 + $0x28] sm:$0xff] }
 0x31e   : > { %6423 = vst [vmem:[#allocation17_spill] sm:$0xff] %v5761_v35  ;;  %v5773_v7 = vadd.f32 %v1875_v29, %v1133_v56  ;;  %v4194_v55 = vpop.f32.mrb[36].mxu1  ;;  %2569 = vperm.xlu0 %4413, %v5779_v10   ;;  %v5790_v56 = vld [vmem:[%s5026_s24 + $0x18] sm:$0xff]  ;;  %v1136_v20 = vmul.f32 %v5665_v27, %v1006_v54  ;;  %v1139_v26 = vmul.f32 %v5667_v40, %v1017_v50  ;;  %v1852_v2 = vpop.permute.xlu1 %1851  ;;  %v6432_v40 = vld [vmem:[#allocation11_spill] sm:$0xff] }
 0x31f   : > { %6424 = vst [vmem:[#allocation18_spill] sm:$0xff] %v5765_v39  ;;  %v1772_v47 = vadd.f32 %v4194_v55, %v5731_v0  ;;  %v1763_v9 = vpop.f32.mrb[37].mxu1  ;;  %2565 = vperm.xlu1 %4412, %v5790_v56   ;;  %v1137_v12 = vmul.f32 %v5659_v44, %v1009_v34  ;;  %v1856_v54 = vpop.permute.xlu0 %1855 }
 0x320   : > { %6426 = vst [vmem:[#allocation8_spill] sm:$0xff] %v5773_v7  ;;  %v1764_v13 = vadd.f32 %v5731_v0, %v1763_v9  ;;  %v4195_v29 = vpop.f32.mrb[38].mxu1 }
 0x321   : > { %v1880_v17 = vmul.f32 %v1836_v53, %v1772_v47  ;;  %v1775_v11 = vadd.f32 %v4195_v29, %v5731_v0  ;;  %v1766_v37 = vpop.f32.mrb[39].mxu1  ;;  %v5800_v47 = vld [vmem:[%s5026_s24 + $0x30] sm:$0xff]  ;;  %v5820_v29 = vld [vmem:[%s5026_s24 + $0x40] sm:$0xff] }
 0x322   : > { %v1878_v55 = vmul.f32 %v5719_v61, %v1764_v13  ;;  %v1767_v30 = vadd.f32 %v5731_v0, %v1766_v37  ;;  %2577 = vperm.xlu0 %4413, %v5800_v47   ;;  %v6434_v13 = vld [vmem:[#allocation12_spill] sm:$0xff]  ;;  %v6436_v37 = vld [vmem:[#allocation14_spill] sm:$0xff] }
 0x323   : > { %v5797_v32 = vadd.f32 %v1880_v17, %v1138_v18  ;;  %v1881_v53 = vmul.f32 %v1840_v49, %v1775_v11  ;;  %2573 = vperm.xlu1 %4412, %v5810_v31   ;;  %v1030_v49 = vadd.f32 %v6432_v40, %v5724_v21  ;;  %v1022_v44 = vadd.f32 %v5724_v21, %v6434_v13 }
 0x324   : > { %v5804_v9 = vadd.f32 %v1878_v55, %v1136_v20  ;;  %v1879_v27 = vmul.f32 %v5726_v28, %v1767_v30  ;;  %v6435_v28 = vld [vmem:[#allocation13_spill] sm:$0xff]  ;;  %v1025_v20 = vadd.f32 %v5724_v21, %v6436_v37  ;;  %v5840_v37 = vld [vmem:[%s5026_s24 + $0x50] sm:$0xff] }
 0x325   : > { %6429 = vst [vmem:[#allocation9_spill] sm:$0xff] %v5797_v32  ;;  %v5807_v61 = vadd.f32 %v1881_v53, %v1139_v26  ;;  %v1033_v18 = vadd.f32 %v6435_v28, %v5724_v21  ;;  %v1860_v26 = vpop.permute.xlu1 %1859  ;;  %v5832_v53 = vld [vmem:[%s5026_s24 + $0x38] sm:$0xff]  ;;  %v1140_v13 = vmul.f32 %v5681_v48, %v1022_v44  ;;  %v5850_v48 = vld [vmem:[%s5026_s24 + $0x48] sm:$0xff] }
 0x326   : > { %6430 = vst [vmem:[#allocation10_spill] sm:$0xff] %v5804_v9  ;;  %v5815_v50 = vadd.f32 %v1879_v27, %v1137_v12  ;;  %2585 = vperm.xlu0 %4413, %v5820_v29   ;;  %v1142_v12 = vmul.f32 %v5688_v23, %v1030_v49 }
 0x327   : > { %6431 = vst [vmem:[#allocation19_spill] sm:$0xff] %v5807_v61  ;;  %v4198_v34 = vpop.f32.mrb[40].mxu1  ;;  %2581 = vperm.xlu1 %4412, %v5832_v53   ;;  %v1143_v41 = vmul.f32 %v5683_v57, %v1033_v18 }
 0x328   : > { %6433 = vst [vmem:[#allocation11_spill] sm:$0xff] %v5815_v50  ;;  %v1788_v17 = vadd.f32 %v4198_v34, %v5731_v0  ;;  %v1779_v11 = vpop.f32.mrb[41].mxu1 }
 0x329   : > { %v1780_v55 = vadd.f32 %v5731_v0, %v1779_v11  ;;  %v4199_v30 = vpop.f32.mrb[42].mxu1  ;;  %v1864_v11 = vpop.permute.xlu0 %1863 }
 0x32a   : > { %v1884_v27 = vmul.f32 %v1852_v2, %v1788_v17  ;;  %v1791_v45 = vadd.f32 %v4199_v30, %v5731_v0  ;;  %v1782_v40 = vpop.f32.mrb[43].mxu1  ;;  %2593 = vperm.xlu0 %4413, %v5840_v37   ;;  %v1141_v2 = vmul.f32 %v5679_v5, %v1025_v20  ;;  %v6441_v30 = vld [vmem:[#allocation3_spill] sm:$0xff]  ;;  %v1868_v5 = vpop.permute.xlu1 %1867  ;;  %v5862_v20 = vld [vmem:[%s5026_s24 + $0x60] sm:$0xff] }
 0x32b   : > { %v1882_v34 = vmul.f32 %v1844_v46, %v1780_v55  ;;  %v1783_v28 = vadd.f32 %v5731_v0, %v1782_v40  ;;  %2589 = vperm.xlu1 %4412, %v5850_v48   ;;  %v6439_v46 = vld [vmem:[#allocation2_spill] sm:$0xff]  ;;  %v1038_v57 = vadd.f32 %v5724_v21, %v6441_v30  ;;  %v6444_v40 = vld [vmem:[#allocation4_spill] sm:$0xff] }
 0x32c   : > { %v5844_v50 = vadd.f32 %v1884_v27, %v1142_v12  ;;  %v1885_v23 = vmul.f32 %v1856_v54, %v1791_v45  ;;  %v1046_v44 = vadd.f32 %v6439_v46, %v5724_v21 }
 0x32d   : > { %v5847_v49 = vadd.f32 %v1882_v34, %v1140_v13  ;;  %v1883_v17 = vmul.f32 %v1848_v14, %v1783_v28  ;;  %v6443_v14 = vld [vmem:[#allocation15_spill] sm:$0xff]  ;;  %v1041_v13 = vadd.f32 %v5724_v21, %v6444_v40  ;;  %v1144_v8 = vmul.f32 %v5695_v51, %v1038_v57  ;;  %v5893_v51 = vld [vmem:[%s6385_s5 + $0x2] ss:$0 sm:$0xff] }
 0x32e   : > { %6437 = vst [vmem:[#allocation12_spill] sm:$0xff] %v5844_v50  ;;  %v5855_v55 = vadd.f32 %v1885_v23, %v1143_v41  ;;  %2601 = vperm.xlu0 %4413, %v5862_v20   ;;  %v1049_v12 = vadd.f32 %v6443_v14, %v5724_v21  ;;  %v1872_v41 = vpop.permute.xlu0 %1871  ;;  %v5873_v23 = vld [vmem:[%s5026_s24 + $0x58] sm:$0xff]  ;;  %v5881_v14 = vld [vmem:[%s5026_s24 + $0x70] sm:$0xff] }
 0x32f   : > { %6438 = vst [vmem:[#allocation13_spill] sm:$0xff] %v5847_v49  ;;  %v5859_v18 = vadd.f32 %v1883_v17, %v1141_v2  ;;  %v4202_v54 = vpop.f32.mrb[44].mxu1  ;;  %2597 = vperm.xlu1 %4412, %v5873_v23   ;;  %v1146_v2 = vmul.f32 %v5705_v52, %v1046_v44  ;;  %v1145_v44 = vmul.f32 %v5693_v60, %v1041_v13 }
 0x330   : > { %6440 = vst [vmem:[#allocation14_spill] sm:$0xff] %v5855_v55  ;;  %v1804_v27 = vadd.f32 %v4202_v54, %v5731_v0  ;;  %v1795_v45 = vpop.f32.mrb[45].mxu1 }
 0x331   : > { %6442 = vst [vmem:[#allocation2_spill] sm:$0xff] %v5859_v18  ;;  %v1796_v34 = vadd.f32 %v5731_v0, %v1795_v45  ;;  %v4203_v28 = vpop.f32.mrb[46].mxu1  ;;  %v1147_v45 = vmul.f32 %v5703_v59, %v1049_v12 }
 0x332   : > { %v1888_v17 = vmul.f32 %v1868_v5, %v1804_v27  ;;  %v1807_v46 = vadd.f32 %v4203_v28, %v5731_v0  ;;  %v1798_v30 = vpop.f32.mrb[47].mxu1  ;;  %2609 = vperm.xlu0 %4413, %v5881_v14  }
 0x333   : > { %v1886_v54 = vmul.f32 %v1860_v26, %v1796_v34  ;;  %v1799_v21 = vadd.f32 %v5731_v0, %v1798_v30  ;;  %v5896_v0 = vld [vmem:[%s5026_s24 + $0x68] sm:$0xff]  ;;  %v5910_v34 = vld [vmem:[%s5026_s24 + $0x78] sm:$0xff] }
 0x334   : > { %v5885_v40 = vadd.f32 %v1888_v17, %v1146_v2  ;;  %v1889_v52 = vmul.f32 %v1872_v41, %v1807_v46  ;;  %2605 = vperm.xlu1 %4412, %v5896_v0  }
 0x335   : > { %v5888_v5 = vadd.f32 %v1886_v54, %v1144_v8  ;;  %v1887_v27 = vmul.f32 %v1864_v11, %v1799_v21 }
 0x336   : > { %6445 = vst [vmem:[#allocation3_spill] sm:$0xff] %v5885_v40  ;;  %v5899_v26 = vadd.f32 %v1889_v52, %v1147_v45 }
 0x337   : > { %6446 = vst [vmem:[#allocation15_spill] sm:$0xff] %v5888_v5  ;;  %v5901_v59 = vadd.f32 %v1887_v27, %v1145_v44  ;;  %v4254_v57 = vpop.f32.mrb[48].mxu1 }
 0x338   : > { %6447 = vst [vmem:[#allocation4_spill] sm:$0xff] %v5899_v26  ;;  %v5904_v12 = vadd.f32 %v4254_v57, %v5893_v51  ;;  %v2183_v60 = vpop.f32.mrb[49].mxu1  ;;  %2613 = vperm.xlu1 %4412, %v5910_v34  }
 0x339   : > { %6448 = vst [vmem:[#allocation20_spill] sm:$0xff] %v5901_v59  ;;  %v5907_v11 = vadd.f32 %v5893_v51, %v2183_v60  ;;  %v4255_v13 = vpop.f32.mrb[50].mxu1 }
 0x33a   : > { %v3684_v28 = vmul.f32 -1.442695, %v5904_v12  ;;  %v5915_v41 = vadd.f32 %v4255_v13, %v5893_v51  ;;  %v2186_v2 = vpop.f32.mrb[51].mxu1 }
 0x33b   : > { %v3682_v17 = vmul.f32 -1.442695, %v5907_v11  ;;  %v5919_v46 = vadd.f32 %v5893_v51, %v2186_v2 }
 0x33c   : > { %4648 = vpow2.f32 %v3684_v28  ;;  %v3685_v30 = vmul.f32 -1.442695, %v5915_v41 }
 0x33d   : > { %4650 = vpow2.f32 %v3682_v17  ;;  %v3683_v8 = vmul.f32 -1.442695, %v5919_v46 }
 0x33e   : > { %4652 = vpow2.f32 %v3685_v30 }
 0x33f   : > { %4654 = vpow2.f32 %v3683_v8  ;;  %v4258_v54 = vpop.f32.mrb[52].mxu1 }
 0x340   : > { %v5924_v21 = vadd.f32 %v4258_v54, %v5893_v51  ;;  %v2199_v45 = vpop.f32.mrb[53].mxu1 }
 0x341   : > { %v5927_v52 = vadd.f32 %v5893_v51, %v2199_v45  ;;  %v4259_v44 = vpop.f32.mrb[54].mxu1 }
 0x342   : > { %v3688_v27 = vmul.f32 -1.442695, %v5924_v21  ;;  %v5931_v57 = vadd.f32 %v4259_v44, %v5893_v51  ;;  %v2202_v60 = vpop.f32.mrb[55].mxu1 }
 0x343   : > { %v3686_v13 = vmul.f32 -1.442695, %v5927_v52  ;;  %v5935_v28 = vadd.f32 %v5893_v51, %v2202_v60 }
 0x344   : > { %4656 = vpow2.f32 %v3688_v27  ;;  %v3689_v2 = vmul.f32 -1.442695, %v5931_v57 }
 0x345   : > { %4658 = vpow2.f32 %v3686_v13  ;;  %v3687_v17 = vmul.f32 -1.442695, %v5935_v28 }
 0x346   : > { %v4649_v30 = vpop.eup %4648  ;;  %4660 = vpow2.f32 %v3689_v2 }
 0x347   : > { %v4651_v8 = vpop.eup %4650  ;;  %v2296_v54 = vadd.f32 1.0, %v4649_v30  ;;  %4662 = vpow2.f32 %v3687_v17  ;;  %v4262_v45 = vpop.f32.mrb[56].mxu1 }
 0x348   : > { %v4653_v44 = vpop.eup %4652  ;;  %v2294_v59 = vadd.f32 1.0, %v4651_v8  ;;  %v5940_v26 = vadd.f32 %v4262_v45, %v5893_v51  ;;  %v2215_v5 = vpop.f32.mrb[57].mxu1 }
 0x349   : > { %v4655_v60 = vpop.eup %4654  ;;  %4664 = vrcp.f32 %v2296_v54  ;;  %v2297_v27 = vadd.f32 1.0, %v4653_v44  ;;  %v5943_v40 = vadd.f32 %v5893_v51, %v2215_v5  ;;  %v4263_v13 = vpop.f32.mrb[58].mxu1  ;;  %v5958_v44 = vld [vmem:[%s6383_s3 + $0x2] ss:$0 sm:$0xff] }
 0x34a   : > { %4666 = vrcp.f32 %v2294_v59  ;;  %v2295_v18 = vadd.f32 1.0, %v4655_v60  ;;  %v3692_v2 = vmul.f32 -1.442695, %v5940_v26  ;;  %v5947_v17 = vadd.f32 %v4263_v13, %v5893_v51  ;;  %v2218_v30 = vpop.f32.mrb[59].mxu1 }
 0x34b   : > { %4668 = vrcp.f32 %v2297_v27  ;;  %v3690_v8 = vmul.f32 -1.442695, %v5943_v40  ;;  %v5951_v45 = vadd.f32 %v5893_v51, %v2218_v30 }
 0x34c   : > { %4670 = vrcp.f32 %v2295_v18  ;;  %v3693_v54 = vmul.f32 -1.442695, %v5947_v17 }
 0x34d   : > { %4672 = vpow2.f32 %v3692_v2  ;;  %v3691_v5 = vmul.f32 -1.442695, %v5951_v45 }
 0x34e   : > { %v4657_v59 = vpop.eup %4656  ;;  %4674 = vpow2.f32 %v3690_v8  ;;  %v2022_v8 = vadd.f32 %v5616_v36, %v5958_v44 }
 0x34f   : > { %v4659_v60 = vpop.eup %4658  ;;  %v2300_v27 = vadd.f32 1.0, %v4657_v59  ;;  %4676 = vpow2.f32 %v3693_v54  ;;  %v4266_v13 = vpop.f32.mrb[60].mxu1 }
 0x350   : > { %v4661_v55 = vpop.eup %4660  ;;  %v2298_v30 = vadd.f32 1.0, %v4659_v60  ;;  %4678 = vpow2.f32 %v3691_v5  ;;  %v5961_v18 = vadd.f32 %v4266_v13, %v5893_v51  ;;  %v2231_v2 = vpop.f32.mrb[61].mxu1 }
 0x351   : > { %v4663_v49 = vpop.eup %4662  ;;  %4680 = vrcp.f32 %v2300_v27  ;;  %v2301_v50 = vadd.f32 1.0, %v4661_v55  ;;  %v5966_v61 = vadd.f32 %v5893_v51, %v2231_v2  ;;  %v4267_v9 = vpop.f32.mrb[62].mxu1  ;;  %v2014_v55 = vadd.f32 %v5958_v44, %v5621_v1 }
 0x352   : > { %4682 = vrcp.f32 %v2298_v30  ;;  %v2299_v54 = vadd.f32 1.0, %v4663_v49  ;;  %v3696_v59 = vmul.f32 -1.442695, %v5961_v18  ;;  %v5970_v5 = vadd.f32 %v4267_v9, %v5893_v51  ;;  %v2234_v60 = vpop.f32.mrb[63].mxu1 }
 0x353   : > { %v4665_v13 = vpop.eup %4664  ;;  %4684 = vrcp.f32 %v2301_v50  ;;  %v3694_v27 = vmul.f32 -1.442695, %v5966_v61  ;;  %v5976_v36 = vadd.f32 %v5893_v51, %v2234_v60  ;;  %v2025_v1 = vadd.f32 %v5623_v16, %v5958_v44 }
 0x354   : > { %v4667_v2 = vpop.eup %4666  ;;  %v2344_v30 = vmul.f32 %v4665_v13, %v5904_v12  ;;  %4686 = vrcp.f32 %v2299_v54  ;;  %v3697_v49 = vmul.f32 -1.442695, %v5970_v5  ;;  %v2017_v60 = vadd.f32 %v5958_v44, %v5625_v43 }
 0x355   : > { %v4669_v32 = vpop.eup %4668  ;;  %v2342_v9 = vmul.f32 %v4667_v2, %v5907_v11  ;;  %4688 = vpow2.f32 %v3696_v59  ;;  %v3695_v50 = vmul.f32 -1.442695, %v5976_v36  ;;  %v2038_v16 = vadd.f32 %v5634_v15, %v5958_v44 }
 0x356   : > { %v4671_v7 = vpop.eup %4670  ;;  %v2345_v39 = vmul.f32 %v4669_v32, %v5915_v41  ;;  %v2360_v35 = vmul.f32 %v2344_v30, %v2022_v8  ;;  %4690 = vpow2.f32 %v3694_v27  ;;  %v2030_v43 = vadd.f32 %v5958_v44, %v5639_v38 }
 0x357   : > { %v4673_v51 = vpop.eup %4672  ;;  %v2343_v12 = vmul.f32 %v4671_v7, %v5919_v46  ;;  %v2358_v54 = vmul.f32 %v2342_v9, %v2014_v55  ;;  %4692 = vpow2.f32 %v3697_v49  ;;  %v4497_v49 = vld [vmem:[%s6384_s4 + $0xc8] sm:$0xff]   ;;  %v2041_v38 = vadd.f32 %v5641_v42, %v5958_v44 }
 0x358   : > { %v4675_v11 = vpop.eup %4674  ;;  %v2304_v59 = vadd.f32 1.0, %v4673_v51  ;;  %v2361_v13 = vmul.f32 %v2345_v39, %v2025_v1  ;;  %4694 = vpow2.f32 %v3695_v50 }
 0x359   : > { %v4677_v2 = vpop.eup %4676  ;;  %v2302_v62 = vadd.f32 1.0, %v4675_v11  ;;  %v2359_v32 = vmul.f32 %v2343_v12, %v2017_v60  ;;  %v2033_v12 = vadd.f32 %v5958_v44, %v5643_v63  ;;  %v2054_v63 = vadd.f32 %v5655_v22, %v5958_v44 }
 0x35a   : > { %v4679_v41 = vpop.eup %4678  ;;  %4696 = vrcp.f32 %v2304_v59  ;;  %v2305_v8 = vadd.f32 1.0, %v4677_v2  ;;  %v2375_v27 = vpack.c.bf16 %v2361_v13, %v2360_v35 }
 0x35b   : > { %v4681_v7 = vpop.eup %4680  ;;  %4698 = vrcp.f32 %v2302_v62  ;;  %v2303_v46 = vadd.f32 1.0, %v4679_v41  ;;  %v2374_v55 = vpack.c.bf16 %v2359_v32, %v2358_v54 }
 0x35c   : > { %v4683_v30 = vpop.eup %4682  ;;  %v2348_v39 = vmul.f32 %v4681_v7, %v5924_v21  ;;  %4700 = vrcp.f32 %v2305_v8  ;;  %v2046_v8 = vadd.f32 %v5958_v44, %v5657_v58  ;;  %v2057_v58 = vadd.f32 %v5661_v33, %v5958_v44 }
 0x35d   : > { %v4685_v9 = vpop.eup %4684  ;;  %v2346_v35 = vmul.f32 %v4683_v30, %v5927_v52  ;;  %4702 = vrcp.f32 %v2303_v46  ;;  %4284 = vmatprep.mubr.bf16.mxu0 %v2374_v55 }
 0x35e   : > { %v4687_v15 = vpop.eup %4686  ;;  %v2349_v62 = vmul.f32 %v4685_v9, %v5931_v57  ;;  %v2364_v50 = vmul.f32 %v2348_v39, %v2038_v16  ;;  %4285 = vmatmul.mubr.bf16.vlgmr.msra.gmra.mrb[64].mxu0 %v2375_v27  ;;  %v4498_v57 = vld [vmem:[%s6384_s4 + $0xd0] sm:$0xff]   ;;  %v4499_v27 = vld [vmem:[%s6384_s4 + $0xd8] sm:$0xff]  }
 0x35f   : > { %v4689_v1 = vpop.eup %4688  ;;  %v2347_v21 = vmul.f32 %v4687_v15, %v5935_v28  ;;  %v2362_v51 = vmul.f32 %v2346_v35, %v2030_v43  ;;  %4333 = vmatpush3.bf16.msra.mxu0 %v5650_v4 }
 0x360   : > { %v4691_v52 = vpop.eup %4690  ;;  %v2308_v54 = vadd.f32 1.0, %v4689_v1  ;;  %v2365_v60 = vmul.f32 %v2349_v62, %v2041_v38  ;;  %4334 = vmatprep.subr.bf16.mxu0 %v4497_v49  ;;  %v4501_v38 = vld [vmem:[%s6384_s4 + $0xe8] sm:$0xff]  }
 0x361   : > { %v4693_v11 = vpop.eup %4692  ;;  %v2306_v42 = vadd.f32 1.0, %v4691_v52  ;;  %v2363_v59 = vmul.f32 %v2347_v21, %v2033_v12  ;;  %v6449_v52 = vld [vmem:[#allocation5_spill] sm:$0xff] }
 0x362   : > { %v4695_v13 = vpop.eup %4694  ;;  %4704 = vrcp.f32 %v2308_v54  ;;  %v2309_v28 = vadd.f32 1.0, %v4693_v11  ;;  %v2377_v2 = vpack.c.bf16 %v2365_v60, %v2364_v50  ;;  %v6450_v60 = vld [vmem:[#allocation6_spill] sm:$0xff] }
 0x363   : > { %4706 = vrcp.f32 %v2306_v42  ;;  %v2307_v32 = vadd.f32 1.0, %v4695_v13  ;;  %4335 = vmatpush3.bf16.msra.mxu0 %v4497_v49  ;;  %v2376_v4 = vpack.c.bf16 %v2363_v59, %v2362_v51  ;;  %v4801_v13 = vld [vmem:[%s4891_s19 + $0x8] sm:$0xff]  }
 0x364   : > { %v4697_v41 = vpop.eup %4696  ;;  %4708 = vrcp.f32 %v2309_v28  ;;  %4336 = vmatprep.subr.bf16.mxu0 %v4498_v57  ;;  %v4802_v28 = vld [vmem:[%s4891_s19 + $0x10] sm:$0xff]  }
 0x365   : > { %v4699_v16 = vpop.eup %4698  ;;  %v2352_v7 = vmul.f32 %v4697_v41, %v5940_v26  ;;  %4710 = vrcp.f32 %v2307_v32  ;;  %4288 = vmatprep.mubr.bf16.mxu0 %v2376_v4  ;;  %v2049_v26 = vadd.f32 %v5958_v44, %v5663_v6  ;;  %v4804_v32 = vld [vmem:[%s4891_s19 + $0x20] sm:$0xff]   ;;  %v4806_v4 = vld [vmem:[%s4891_s19 + $0x30] sm:$0xff]   ;;  %v4807_v41 = vld [vmem:[%s4891_s19 + $0x38] sm:$0xff]  }
 0x366   : > { %v4701_v46 = vpop.eup %4700  ;;  %v2350_v22 = vmul.f32 %v4699_v16, %v5943_v40  ;;  %4289 = vmatmul.mubr.bf16.gmra.mrb[68].mxu0 %v2377_v2  ;;  %v4500_v40 = vld [vmem:[%s6384_s4 + $0xe0] sm:$0xff]   ;;  %v4803_v2 = vld [vmem:[%s4891_s19 + $0x18] sm:$0xff]   ;;  %v4514_v16 = vld [vmem:[%s6386_s6 + $0xd0] sm:$0xff]  }
 0x367   : > { %v4703_v43 = vpop.eup %4702  ;;  %v2353_v55 = vmul.f32 %v4701_v46, %v5947_v17  ;;  %v2368_v30 = vmul.f32 %v2352_v7, %v2054_v63  ;;  %4337 = vmatpush3.bf16.msra.mxu0 %v4498_v57  ;;  %v2070_v17 = vadd.f32 %v5669_v24, %v5958_v44  ;;  %v2065_v57 = vadd.f32 %v5958_v44, %v6450_v60  ;;  %v4805_v63 = vld [vmem:[%s4891_s19 + $0x28] sm:$0xff]   ;;  %v4515_v7 = vld [vmem:[%s6386_s6 + $0xd8] sm:$0xff]   ;;  %v4516_v46 = vld [vmem:[%s6386_s6 + $0xe0] sm:$0xff]  }
 0x368   : > { %v2351_v39 = vmul.f32 %v4703_v43, %v5951_v45  ;;  %v2366_v49 = vmul.f32 %v2350_v22, %v2046_v8  ;;  %4338 = vmatprep.subr.bf16.mxu0 %v4499_v27  ;;  %v2062_v45 = vadd.f32 %v5958_v44, %v5671_v19  ;;  %v2073_v19 = vadd.f32 %v6449_v52, %v5958_v44  ;;  %v4504_v44 = vld [vmem:[%s6384_s4 + $0xf8] sm:$0xff]   ;;  %v4512_v8 = vld [vmem:[%s6386_s6 + $0xc0] sm:$0xff]   ;;  %v6069_v22 = vpop.f32.mrb[64].mxu1  ;;  %v4517_v43 = vld [vmem:[%s6386_s6 + $0xe8] sm:$0xff]  }
 0x369   : > { %v2369_v9 = vmul.f32 %v2353_v55, %v2057_v58  ;;  %4364 = vmatprep.subr.bf16.mxu1 %v4512_v8  ;;  %v6074_v55 = vpop.f32.mrb[65].mxu1  ;;  %v6453_v60 = vld [vmem:[#allocation17_spill] sm:$0xff] }
 0x36a   : > { %v2367_v35 = vmul.f32 %v2351_v39, %v2049_v26  ;;  %4365 = vmatpush3.bf16.msra.mxu1 %v4512_v8  ;;  %v4518_v39 = vld [vmem:[%s6386_s6 + $0xf0] sm:$0xff]   ;;  %v4519_v26 = vld [vmem:[%s6386_s6 + $0xf8] sm:$0xff]  }
 0x36b   : > { %4339 = vmatpush3.bf16.msra.mxu0 %v4499_v27  ;;  %v2379_v15 = vpack.c.bf16 %v2369_v9, %v2368_v30  ;;  %v4513_v27 = vld [vmem:[%s6386_s6 + $0xc8] sm:$0xff]   ;;  %v6076_v30 = vpop.f32.mrb[66].mxu1 }
 0x36c   : > { %v4705_v33 = vpop.eup %4704  ;;  %v2378_v62 = vpack.c.bf16 %v2367_v35, %v2366_v49  ;;  %4340 = vmatprep.subr.bf16.mxu0 %v4500_v40  ;;  %4366 = vmatprep.subr.bf16.mxu1 %v4513_v27  ;;  %v6078_v58 = vpop.f32.mrb[67].mxu1 }
 0x36d   : > { %v4707_v50 = vpop.eup %4706  ;;  %v2356_v6 = vmul.f32 %v4705_v33, %v5961_v18  ;;  %v6083_v49 = vpop.f32.mrb[68].mxu1 }
 0x36e   : > { %v4709_v1 = vpop.eup %4708  ;;  %v2354_v21 = vmul.f32 %v4707_v50, %v5966_v61  ;;  %4292 = vmatprep.mubr.bf16.mxu0 %v2378_v62  ;;  %v4502_v61 = vld [vmem:[%s6384_s4 + $0xf0] sm:$0xff]   ;;  %4367 = vmatpush3.bf16.msra.mxu1 %v4513_v27 }
 0x36f   : > { %v4711_v24 = vpop.eup %4710  ;;  %v2357_v51 = vmul.f32 %v4709_v1, %v5970_v5  ;;  %v2372_v12 = vmul.f32 %v2356_v6, %v2070_v17  ;;  %4293 = vmatmul.mubr.bf16.gmra.mrb[72].mxu0 %v2379_v15  ;;  %4368 = vmatprep.subr.bf16.mxu1 %v4514_v16  ;;  %v4819_v1 = vmov 3  }
 0x370   : > { %v2355_v54 = vmul.f32 %v4711_v24, %v5976_v36  ;;  %v2370_v18 = vmul.f32 %v2354_v21, %v2062_v45  ;;  %4341 = vmatpush3.bf16.msra.mxu0 %v4500_v40  ;;  %v4800_v36 = vld [vmem:[%s4891_s19] sm:$0xff]   ;;  %v6088_v40 = vpop.f32.mrb[69].mxu1  ;;  %4415 = vset.pattern.permute.xlu1 %v4819_v1  ;;  %v6451_v21 = vld [vmem:[#allocation7_spill] sm:$0xff]  ;;  %v2554_v24 = vpop.permute.xlu1 %2553 }
 0x371   : > { %v2373_v11 = vmul.f32 %v2357_v51, %v2073_v19  ;;  %4342 = vmatprep.subr.bf16.mxu0 %v4501_v38  ;;  %v6090_v9 = vpop.f32.mrb[70].mxu1  ;;  %4414 = vset.pattern.permute.xlu0 %v4819_v1 }
 0x372   : > { %v2371_v5 = vmul.f32 %v2355_v54, %v2065_v57  ;;  %4369 = vmatpush3.bf16.msra.mxu1 %v4514_v16  ;;  %v6092_v35 = vpop.f32.mrb[71].mxu1  ;;  %3299 = vperm.xlu1 %4415, %v5757_v25  }
 0x373   : > { %v2381_v42 = vpack.c.bf16 %v2373_v11, %v2372_v12  ;;  %4370 = vmatprep.subr.bf16.mxu1 %v4515_v7  ;;  %v6094_v17 = vpop.f32.mrb[72].mxu1  ;;  %3295 = vperm.xlu0 %4414, %v6451_v21  }
 0x374   : > { %4343 = vmatpush3.bf16.msra.mxu0 %v4501_v38  ;;  %v2380_v59 = vpack.c.bf16 %v2371_v5, %v2370_v18  ;;  %v6096_v15 = vpop.f32.mrb[73].mxu1  ;;  %v2562_v51 = vpop.permute.xlu1 %2561  ;;  %v6452_v18 = vld [vmem:[#allocation16_spill] sm:$0xff] }
 0x375   : > { %4344 = vmatprep.subr.bf16.mxu0 %v4502_v61  ;;  %v6098_v33 = vpop.f32.mrb[74].mxu1 }
 0x376   : > { %4296 = vmatprep.mubr.bf16.mxu0 %v2380_v59  ;;  %4371 = vmatpush3.bf16.msra.mxu1 %v4515_v7  ;;  %v6100_v45 = vpop.f32.mrb[75].mxu1  ;;  %v6455_v59 = vld [vmem:[#allocation8_spill] sm:$0xff]  ;;  %v6456_v7 = vld [vmem:[#allocation9_spill] sm:$0xff] }
 0x377   : > { %4297 = vmatmul.mubr.bf16.gmra.mrb[76].mxu0 %v2381_v42  ;;  %4372 = vmatprep.subr.bf16.mxu1 %v4516_v46  ;;  %v6102_v62 = vpop.f32.mrb[76].mxu1 }
 0x378   : > { %4345 = vmatpush3.bf16.msra.mxu0 %v4502_v61  ;;  %4348 = vmatprep.mubr.bf16.mxu0 %v4800_v36  ;;  %v6104_v50 = vpop.f32.mrb[77].mxu1  ;;  %v6454_v61 = vld [vmem:[#allocation18_spill] sm:$0xff] }
 0x379   : > { %4346 = vmatprep.subr.bf16.mxu0 %v4504_v44  ;;  %v6106_v6 = vpop.f32.mrb[78].mxu1  ;;  %3303 = vperm.xlu1 %4415, %v5768_v3  }
 0x37a   : > { %4373 = vmatpush3.bf16.msra.mxu1 %v4516_v46  ;;  %v6108_v38 = vpop.f32.mrb[79].mxu1  ;;  %3307 = vperm.xlu0 %4414, %v5790_v56   ;;  %v6127_v56 = vld [vmem:[%s6387_s7 + $0x2] ss:$0 sm:$0xff] }
 0x37b   : > { %4374 = vmatprep.subr.bf16.mxu1 %v4517_v43 }
 0x37c   : > { %4347 = vmatpush3.bf16.msra.mxu0 %v4504_v44 }
 0x37d   : > { %3311 = vperm.xlu1 %4415, %v5779_v10  }
 0x37e   : > { %4375 = vmatpush3.bf16.msra.mxu1 %v4517_v43  ;;  %3315 = vperm.xlu0 %4414, %v5810_v31  }
 0x37f   : > { %4349 = vmatmul.mubr.bf16.vlgmr.msra.gmra.mrb[80].mxu0 %v4801_v13  ;;  %4376 = vmatprep.subr.bf16.mxu1 %v4518_v39 }
 0x380   : > { %4352 = vmatprep.mubr.bf16.mxu0 %v4802_v28 }
 0x381   : > { %3319 = vperm.xlu1 %4415, %v5800_v47  }
 0x382   : > { %4377 = vmatpush3.bf16.msra.mxu1 %v4518_v39  ;;  %3323 = vperm.xlu0 %4414, %v5832_v53  }
 0x383   : > { %4378 = vmatprep.subr.bf16.mxu1 %v4519_v26 }
 0x385   : > { %3327 = vperm.xlu1 %4415, %v5820_v29  }
 0x386   : > { %4379 = vmatpush3.bf16.msra.mxu1 %v4519_v26  ;;  %3331 = vperm.xlu0 %4414, %v5850_v48   ;;  %v6457_v26 = vld [vmem:[#allocation10_spill] sm:$0xff] }
 0x387   : > { %4353 = vmatmul.mubr.bf16.gmra.mrb[84].mxu0 %v4803_v2 }
 0x388   : > { %4356 = vmatprep.mubr.bf16.mxu0 %v4804_v32 }
 0x389   : > { %3335 = vperm.xlu1 %4415, %v5840_v37  }
 0x38a   : > { %3339 = vperm.xlu0 %4414, %v5873_v23  }
 0x38d   : > { %3343 = vperm.xlu1 %4415, %v5862_v20  }
 0x38e   : > { %3347 = vperm.xlu0 %4414, %v5896_v0  }
 0x38f   : > { %4357 = vmatmul.mubr.bf16.gmra.mrb[88].mxu0 %v4805_v63 }
 0x390   : > { %4360 = vmatprep.mubr.bf16.mxu0 %v4806_v4 }
 0x391   : > { %3351 = vperm.xlu1 %4415, %v5881_v14  }
 0x392   : > { %3355 = vperm.xlu0 %4414, %v5910_v34  }
 0x397   : > { %4361 = vmatmul.mubr.bf16.gmra.mrb[92].mxu0 %v4807_v41 }
 0x399   : > { %v2558_v25 = vpop.permute.xlu0 %2557 }
 0x39d   : > { %v2570_v3 = vpop.permute.xlu0 %2569 }
 0x39e   : > { %v2566_v12 = vpop.permute.xlu1 %2565 }
 0x3a1   : > { %v2578_v53 = vpop.permute.xlu0 %2577 }
 0x3a2   : > { %v2574_v10 = vpop.permute.xlu1 %2573 }
 0x3a5   : > { %v2586_v42 = vpop.permute.xlu0 %2585 }
 0x3a6   : > { %v2582_v52 = vpop.permute.xlu1 %2581 }
 0x3a9   : > { %v2594_v39 = vpop.permute.xlu0 %2593 }
 0x3aa   : > { %v2590_v2 = vpop.permute.xlu1 %2589 }
 0x431   : > { %v4286_v47 = vpop.f32.mrb[64].mxu0 }
 0x432   : > { %v2498_v31 = vadd.f32 %v4286_v47, %v6127_v56  ;;  %v2489_v29 = vpop.f32.mrb[65].mxu0 }
 0x433   : > { %v2490_v37 = vadd.f32 %v6127_v56, %v2489_v29  ;;  %v4287_v48 = vpop.f32.mrb[66].mxu0 }
 0x434   : > { %v2618_v20 = vmul.f32 %v2562_v51, %v2498_v31  ;;  %v2501_v23 = vadd.f32 %v4287_v48, %v6127_v56  ;;  %v2492_v0 = vpop.f32.mrb[67].mxu0  ;;  %v2602_v48 = vpop.permute.xlu0 %2601 }
 0x435   : > { %v2616_v19 = vmul.f32 %v2554_v24, %v2490_v37  ;;  %v2493_v54 = vadd.f32 %v6127_v56, %v2492_v0  ;;  %v6458_v24 = vld [vmem:[#allocation19_spill] sm:$0xff] }
 0x436   : > { %v6136_v14 = vadd.f32 %v2618_v20, %v6452_v18  ;;  %v2619_v34 = vmul.f32 %v2566_v12, %v2501_v23  ;;  %v6459_v12 = vld [vmem:[#allocation11_spill] sm:$0xff] }
 0x437   : > { %v6139_v57 = vadd.f32 %v2616_v19, %v6453_v60  ;;  %v2617_v11 = vmul.f32 %v2558_v25, %v2493_v54  ;;  %v2598_v25 = vpop.permute.xlu1 %2597  ;;  %v6460_v54 = vld [vmem:[#allocation12_spill] sm:$0xff]  ;;  %v6461_v60 = vld [vmem:[#allocation13_spill] sm:$0xff] }
 0x438   : > { %v6142_v5 = vadd.f32 %v2619_v34, %v6454_v61 }
 0x439   : > { %v6145_v44 = vadd.f32 %v2617_v11, %v6455_v59  ;;  %v4290_v36 = vpop.f32.mrb[68].mxu0  ;;  %v6462_v59 = vld [vmem:[#allocation14_spill] sm:$0xff] }
 0x43a   : > { %v2514_v13 = vadd.f32 %v4290_v36, %v6127_v56  ;;  %v2505_v28 = vpop.f32.mrb[69].mxu0 }
 0x43b   : > { %v2506_v32 = vadd.f32 %v6127_v56, %v2505_v28  ;;  %v4291_v63 = vpop.f32.mrb[70].mxu0  ;;  %v2606_v19 = vpop.permute.xlu1 %2605 }
 0x43c   : > { %v2622_v4 = vmul.f32 %v2578_v53, %v2514_v13  ;;  %v2517_v41 = vadd.f32 %v4291_v63, %v6127_v56  ;;  %v2508_v8 = vpop.f32.mrb[71].mxu0  ;;  %v6463_v13 = vld [vmem:[#allocation2_spill] sm:$0xff]  ;;  %v2610_v63 = vpop.permute.xlu0 %2609 }
 0x43d   : > { %v2620_v27 = vmul.f32 %v2570_v3, %v2506_v32  ;;  %v2509_v16 = vadd.f32 %v6127_v56, %v2508_v8 }
 0x43e   : > { %v6152_v46 = vadd.f32 %v2622_v4, %v6456_v7  ;;  %v2623_v43 = vmul.f32 %v2582_v52, %v2517_v41 }
 0x43f   : > { %v6155_v1 = vadd.f32 %v2620_v27, %v6457_v26  ;;  %v2621_v21 = vmul.f32 %v2574_v10, %v2509_v16  ;;  %v2614_v27 = vpop.permute.xlu1 %2613  ;;  %v6464_v26 = vld [vmem:[#allocation3_spill] sm:$0xff] }
 0x440   : > { %v6158_v51 = vadd.f32 %v2623_v43, %v6458_v24 }
 0x441   : > { %v6161_v47 = vadd.f32 %v2621_v21, %v6459_v12 }
 0x442   : > { %v4294_v31 = vpop.f32.mrb[72].mxu0 }
 0x443   : > { %v2530_v3 = vadd.f32 %v4294_v31, %v6127_v56  ;;  %v2521_v29 = vpop.f32.mrb[73].mxu0 }
 0x444   : > { %v2522_v53 = vadd.f32 %v6127_v56, %v2521_v29  ;;  %v4295_v37 = vpop.f32.mrb[74].mxu0  ;;  %v6466_v29 = vld [vmem:[#allocation4_spill] sm:$0xff] }
 0x445   : > { %v2626_v20 = vmul.f32 %v2594_v39, %v2530_v3  ;;  %v2533_v23 = vadd.f32 %v4295_v37, %v6127_v56  ;;  %v2524_v0 = vpop.f32.mrb[75].mxu0  ;;  %v6192_v3 = vld [vmem:[%s6385_s5 + $0x3] ss:$0 sm:$0xff]  ;;  %v6468_v37 = vld [vmem:[#allocation20_spill] sm:$0xff] }
 0x446   : > { %v2624_v10 = vmul.f32 %v2586_v42, %v2522_v53  ;;  %v2525_v52 = vadd.f32 %v6127_v56, %v2524_v0 }
 0x447   : > { %v6168_v18 = vadd.f32 %v2626_v20, %v6460_v54  ;;  %v2627_v34 = vmul.f32 %v2598_v25, %v2533_v23  ;;  %v6465_v25 = vld [vmem:[#allocation15_spill] sm:$0xff] }
 0x448   : > { %v6171_v11 = vadd.f32 %v2624_v10, %v6461_v60  ;;  %v2625_v61 = vmul.f32 %v2590_v2, %v2525_v52 }
 0x449   : > { %v6174_v36 = vadd.f32 %v2627_v34, %v6462_v59 }
 0x44a   : > { %v6177_v28 = vadd.f32 %v2625_v61, %v6463_v13  ;;  %v4298_v32 = vpop.f32.mrb[76].mxu0 }
 0x44b   : > { %v2546_v42 = vadd.f32 %v4298_v32, %v6127_v56  ;;  %v2537_v4 = vpop.f32.mrb[77].mxu0 }
 0x44c   : > { %v2538_v41 = vadd.f32 %v6127_v56, %v2537_v4  ;;  %v4299_v8 = vpop.f32.mrb[78].mxu0 }
 0x44d   : > { %v2630_v16 = vmul.f32 %v2610_v63, %v2546_v42  ;;  %v2549_v7 = vadd.f32 %v4299_v8, %v6127_v56  ;;  %v2540_v43 = vpop.f32.mrb[79].mxu0 }
 0x44e   : > { %v2628_v2 = vmul.f32 %v2602_v48, %v2538_v41  ;;  %v2541_v39 = vadd.f32 %v6127_v56, %v2540_v43 }
 0x44f   : > { %v6184_v21 = vadd.f32 %v2630_v16, %v6464_v26  ;;  %v2631_v24 = vmul.f32 %v2614_v27, %v2549_v7 }
 0x450   : > { %v6187_v12 = vadd.f32 %v2628_v2, %v6465_v25  ;;  %v2629_v31 = vmul.f32 %v2606_v19, %v2541_v39 }
 0x451   : > { %v6195_v53 = vadd.f32 %v2631_v24, %v6466_v29 }
 0x452   : > { %v6198_v48 = vadd.f32 %v2629_v31, %v6468_v37  ;;  %v4350_v56 = vpop.f32.mrb[80].mxu0 }
 0x453   : > { %6467 = vst [vmem:[#allocation5_spill] sm:$0xff] %v6195_v53  ;;  %v6201_v20 = vadd.f32 %v4350_v56, %v6192_v3  ;;  %v2925_v23 = vpop.f32.mrb[81].mxu0 }
 0x454   : > { %6469 = vst [vmem:[#allocation6_spill] sm:$0xff] %v6198_v48  ;;  %v6204_v0 = vadd.f32 %v6192_v3, %v2925_v23  ;;  %v4351_v10 = vpop.f32.mrb[82].mxu0 }
 0x455   : > { %v3778_v52 = vmul.f32 -1.442695, %v6201_v20  ;;  %v6208_v19 = vadd.f32 %v4351_v10, %v6192_v3  ;;  %v2928_v54 = vpop.f32.mrb[83].mxu0 }
 0x456   : > { %v3776_v34 = vmul.f32 -1.442695, %v6204_v0  ;;  %v6212_v60 = vadd.f32 %v6192_v3, %v2928_v54 }
 0x457   : > { %4712 = vpow2.f32 %v3778_v52  ;;  %v3779_v61 = vmul.f32 -1.442695, %v6208_v19 }
 0x458   : > { %4714 = vpow2.f32 %v3776_v34  ;;  %v3777_v59 = vmul.f32 -1.442695, %v6212_v60 }
 0x459   : > { %4716 = vpow2.f32 %v3779_v61 }
 0x45a   : > { %4718 = vpow2.f32 %v3777_v59  ;;  %v4354_v13 = vpop.f32.mrb[84].mxu0 }
 0x45b   : > { %v6217_v32 = vadd.f32 %v4354_v13, %v6192_v3  ;;  %v2941_v63 = vpop.f32.mrb[85].mxu0 }
 0x45c   : > { %v6220_v42 = vadd.f32 %v6192_v3, %v2941_v63  ;;  %v4355_v4 = vpop.f32.mrb[86].mxu0 }
 0x45d   : > { %v3782_v41 = vmul.f32 -1.442695, %v6217_v32  ;;  %v6224_v8 = vadd.f32 %v4355_v4, %v6192_v3  ;;  %v2944_v27 = vpop.f32.mrb[87].mxu0 }
 0x45e   : > { %v3780_v16 = vmul.f32 -1.442695, %v6220_v42  ;;  %v6228_v7 = vadd.f32 %v6192_v3, %v2944_v27 }
 0x45f   : > { %4720 = vpow2.f32 %v3782_v41  ;;  %v3783_v43 = vmul.f32 -1.442695, %v6224_v8 }
 0x460   : > { %4722 = vpow2.f32 %v3780_v16  ;;  %v3781_v2 = vmul.f32 -1.442695, %v6228_v7 }
 0x461   : > { %v4713_v39 = vpop.eup %4712  ;;  %4724 = vpow2.f32 %v3783_v43  ;;  %v6251_v43 = vld [vmem:[%s6383_s3 + $0x3] ss:$0 sm:$0xff] }
 0x462   : > { %v4715_v26 = vpop.eup %4714  ;;  %v3038_v24 = vadd.f32 1.0, %v4713_v39  ;;  %4726 = vpow2.f32 %v3781_v2  ;;  %v4358_v25 = vpop.f32.mrb[88].mxu0 }
 0x463   : > { %v4717_v31 = vpop.eup %4716  ;;  %v3036_v29 = vadd.f32 1.0, %v4715_v26  ;;  %v6233_v37 = vadd.f32 %v4358_v25, %v6192_v3  ;;  %v2957_v56 = vpop.f32.mrb[89].mxu0 }
 0x464   : > { %v4719_v23 = vpop.eup %4718  ;;  %4728 = vrcp.f32 %v3038_v24  ;;  %v3039_v10 = vadd.f32 1.0, %v4717_v31  ;;  %v6236_v52 = vadd.f32 %v6192_v3, %v2957_v56  ;;  %v4359_v54 = vpop.f32.mrb[90].mxu0 }
 0x465   : > { %4730 = vrcp.f32 %v3036_v29  ;;  %v3037_v34 = vadd.f32 1.0, %v4719_v23  ;;  %v3786_v61 = vmul.f32 -1.442695, %v6233_v37  ;;  %v6240_v59 = vadd.f32 %v4359_v54, %v6192_v3  ;;  %v2960_v13 = vpop.f32.mrb[91].mxu0 }
 0x466   : > { %4732 = vrcp.f32 %v3039_v10  ;;  %v3784_v63 = vmul.f32 -1.442695, %v6236_v52  ;;  %v6244_v4 = vadd.f32 %v6192_v3, %v2960_v13  ;;  %v2764_v10 = vadd.f32 %v6069_v22, %v6251_v43 }
 0x467   : > { %4734 = vrcp.f32 %v3037_v34  ;;  %v3787_v41 = vmul.f32 -1.442695, %v6240_v59 }
 0x468   : > { %4736 = vpow2.f32 %v3786_v61  ;;  %v3785_v27 = vmul.f32 -1.442695, %v6244_v4 }
 0x469   : > { %v4721_v16 = vpop.eup %4720  ;;  %4738 = vpow2.f32 %v3784_v63 }
 0x46a   : > { %v4723_v2 = vpop.eup %4722  ;;  %v3042_v39 = vadd.f32 1.0, %v4721_v16  ;;  %4740 = vpow2.f32 %v3787_v41  ;;  %v4362_v26 = vpop.f32.mrb[92].mxu0 }
 0x46b   : > { %v4725_v24 = vpop.eup %4724  ;;  %v3040_v25 = vadd.f32 1.0, %v4723_v2  ;;  %4742 = vpow2.f32 %v3785_v27  ;;  %v6254_v31 = vadd.f32 %v4362_v26, %v6192_v3  ;;  %v2973_v29 = vpop.f32.mrb[93].mxu0  ;;  %v2756_v2 = vadd.f32 %v6251_v43, %v6074_v55 }
 0x46c   : > { %v4727_v56 = vpop.eup %4726  ;;  %4744 = vrcp.f32 %v3042_v39  ;;  %v3043_v23 = vadd.f32 1.0, %v4725_v24  ;;  %v6259_v54 = vadd.f32 %v6192_v3, %v2973_v29  ;;  %v4363_v34 = vpop.f32.mrb[94].mxu0  ;;  %v2767_v55 = vadd.f32 %v6076_v30, %v6251_v43 }
 0x46d   : > { %4746 = vrcp.f32 %v3040_v25  ;;  %v3041_v61 = vadd.f32 1.0, %v4727_v56  ;;  %v3790_v13 = vmul.f32 -1.442695, %v6254_v31  ;;  %v6263_v63 = vadd.f32 %v4363_v34, %v6192_v3  ;;  %v2976_v41 = vpop.f32.mrb[95].mxu0 }
 0x46e   : > { %v4729_v27 = vpop.eup %4728  ;;  %4748 = vrcp.f32 %v3043_v23  ;;  %v3788_v16 = vmul.f32 -1.442695, %v6259_v54  ;;  %v6269_v22 = vadd.f32 %v6192_v3, %v2976_v41  ;;  %v2759_v41 = vadd.f32 %v6251_v43, %v6078_v58 }
 0x46f   : > { %v4731_v39 = vpop.eup %4730  ;;  %v3086_v26 = vmul.f32 %v4729_v27, %v6201_v20  ;;  %4750 = vrcp.f32 %v3041_v61  ;;  %v3791_v24 = vmul.f32 -1.442695, %v6263_v63  ;;  %v2780_v30 = vadd.f32 %v6083_v49, %v6251_v43 }
 0x470   : > { %v4733_v25 = vpop.eup %4732  ;;  %v3084_v29 = vmul.f32 %v4731_v39, %v6204_v0  ;;  %4752 = vpow2.f32 %v3790_v13  ;;  %v3789_v56 = vmul.f32 -1.442695, %v6269_v22  ;;  %v2772_v58 = vadd.f32 %v6251_v43, %v6088_v40 }
 0x471   : > { %v4735_v23 = vpop.eup %4734  ;;  %v3087_v34 = vmul.f32 %v4733_v25, %v6208_v19  ;;  %v3102_v48 = vmul.f32 %v3086_v26, %v2764_v10  ;;  %4754 = vpow2.f32 %v3788_v16 }
 0x472   : > { %v4737_v3 = vpop.eup %4736  ;;  %v3085_v20 = vmul.f32 %v4735_v23, %v6212_v60  ;;  %v3100_v61 = vmul.f32 %v3084_v29, %v2756_v2  ;;  %4756 = vpow2.f32 %v3791_v24 }
 0x473   : > { %v4739_v0 = vpop.eup %4738  ;;  %v3046_v13 = vadd.f32 1.0, %v4737_v3  ;;  %v3103_v27 = vmul.f32 %v3087_v34, %v2767_v55  ;;  %4758 = vpow2.f32 %v3789_v56 }
 0x474   : > { %v4741_v39 = vpop.eup %4740  ;;  %v3044_v53 = vadd.f32 1.0, %v4739_v0  ;;  %v3101_v19 = vmul.f32 %v3085_v20, %v2759_v41 }
 0x475   : > { %v4743_v10 = vpop.eup %4742  ;;  %4760 = vrcp.f32 %v3046_v13  ;;  %v3047_v16 = vadd.f32 1.0, %v4741_v39  ;;  %v3117_v26 = vpack.c.bf16 %v3103_v27, %v3102_v48 }
 0x476   : > { %v4745_v60 = vpop.eup %4744  ;;  %4762 = vrcp.f32 %v3044_v53  ;;  %v3045_v2 = vadd.f32 1.0, %v4743_v10  ;;  %v3116_v24 = vpack.c.bf16 %v3101_v19, %v3100_v61  ;;  %v2783_v53 = vadd.f32 %v6090_v9, %v6251_v43 }
 0x477   : > { %v4747_v25 = vpop.eup %4746  ;;  %v3090_v29 = vmul.f32 %v4745_v60, %v6217_v32  ;;  %4764 = vrcp.f32 %v3047_v16  ;;  %v2775_v32 = vadd.f32 %v6251_v43, %v6092_v35  ;;  %v2796_v19 = vadd.f32 %v6094_v17, %v6251_v43 }
 0x478   : > { %v4749_v56 = vpop.eup %4748  ;;  %v3088_v23 = vmul.f32 %v4747_v25, %v6220_v42  ;;  %4766 = vrcp.f32 %v3045_v2  ;;  %4380 = vmatprep.mubr.bf16.mxu1 %v3116_v24  ;;  %v2788_v35 = vadd.f32 %v6251_v43, %v6096_v15  ;;  %v2799_v17 = vadd.f32 %v6098_v33, %v6251_v43 }
 0x479   : > { %v4751_v48 = vpop.eup %4750  ;;  %v3091_v34 = vmul.f32 %v4749_v56, %v6224_v8  ;;  %v3106_v49 = vmul.f32 %v3090_v29, %v2780_v30  ;;  %4381 = vmatmul.mubr.bf16.vlgmr.msra.gmra.mrb[80].mxu1 %v3117_v26  ;;  %v2791_v15 = vadd.f32 %v6251_v43, %v6100_v45 }
 0x47a   : > { %v4753_v55 = vpop.eup %4752  ;;  %v3089_v40 = vmul.f32 %v4751_v48, %v6228_v7  ;;  %v3104_v3 = vmul.f32 %v3088_v23, %v2772_v58  ;;  %v2812_v23 = vadd.f32 %v6102_v62, %v6251_v43  ;;  %v2815_v62 = vadd.f32 %v6106_v6, %v6251_v43  ;;  %v6320_v6 = vld [vmem:[%s6387_s7 + $0x3] ss:$0 sm:$0xff] }
 0x47b   : > { %v4755_v20 = vpop.eup %4754  ;;  %v3050_v61 = vadd.f32 1.0, %v4753_v55  ;;  %v3107_v42 = vmul.f32 %v3091_v34, %v2783_v53 }
 0x47c   : > { %v4757_v41 = vpop.eup %4756  ;;  %v3048_v0 = vadd.f32 1.0, %v4755_v20  ;;  %v3105_v13 = vmul.f32 %v3089_v40, %v2775_v32 }
 0x47d   : > { %v4759_v27 = vpop.eup %4758  ;;  %4768 = vrcp.f32 %v3050_v61  ;;  %v3051_v8 = vadd.f32 1.0, %v4757_v41  ;;  %v3119_v39 = vpack.c.bf16 %v3107_v42, %v3106_v49 }
 0x47e   : > { %4770 = vrcp.f32 %v3048_v0  ;;  %v3049_v9 = vadd.f32 1.0, %v4759_v27  ;;  %v3118_v7 = vpack.c.bf16 %v3105_v13, %v3104_v3 }
 0x47f   : > { %v4761_v10 = vpop.eup %4760  ;;  %4772 = vrcp.f32 %v3051_v8 }
 0x480   : > { %v4763_v16 = vpop.eup %4762  ;;  %v3094_v26 = vmul.f32 %v4761_v10, %v6233_v37  ;;  %4774 = vrcp.f32 %v3049_v9  ;;  %4384 = vmatprep.mubr.bf16.mxu1 %v3118_v7 }
 0x481   : > { %v4765_v30 = vpop.eup %4764  ;;  %v3092_v60 = vmul.f32 %v4763_v16, %v6236_v52  ;;  %4385 = vmatmul.mubr.bf16.gmra.mrb[84].mxu1 %v3119_v39 }
 0x482   : > { %v4767_v2 = vpop.eup %4766  ;;  %v3095_v58 = vmul.f32 %v4765_v30, %v6240_v59  ;;  %v3110_v24 = vmul.f32 %v3094_v26, %v2796_v19  ;;  %v2804_v59 = vadd.f32 %v6251_v43, %v6104_v50  ;;  %v2807_v50 = vadd.f32 %v6251_v43, %v6108_v38 }
 0x483   : > { %v3093_v25 = vmul.f32 %v4767_v2, %v6244_v4  ;;  %v3108_v29 = vmul.f32 %v3092_v60, %v2788_v35 }
 0x484   : > { %v3111_v37 = vmul.f32 %v3095_v58, %v2799_v17 }
 0x485   : > { %v3109_v56 = vmul.f32 %v3093_v25, %v2791_v15 }
 0x486   : > { %v3121_v52 = vpack.c.bf16 %v3111_v37, %v3110_v24 }
 0x487   : > { %v4769_v48 = vpop.eup %4768  ;;  %v3120_v34 = vpack.c.bf16 %v3109_v56, %v3108_v29 }
 0x488   : > { %v4771_v49 = vpop.eup %4770  ;;  %v3098_v33 = vmul.f32 %v4769_v48, %v6254_v31 }
 0x489   : > { %v4773_v53 = vpop.eup %4772  ;;  %v3096_v4 = vmul.f32 %v4771_v49, %v6259_v54  ;;  %4388 = vmatprep.mubr.bf16.mxu1 %v3120_v34  ;;  %v3300_v54 = vpop.permute.xlu1 %3299 }
 0x48a   : > { %v4775_v55 = vpop.eup %4774  ;;  %v3099_v45 = vmul.f32 %v4773_v53, %v6263_v63  ;;  %v3114_v40 = vmul.f32 %v3098_v33, %v2812_v23  ;;  %4389 = vmatmul.mubr.bf16.gmra.mrb[88].mxu1 %v3121_v52  ;;  %v3296_v63 = vpop.permute.xlu0 %3295 }
 0x48b   : > { %v3097_v3 = vmul.f32 %v4775_v55, %v6269_v22  ;;  %v3112_v32 = vmul.f32 %v3096_v4, %v2804_v59 }
 0x48c   : > { %v3115_v20 = vmul.f32 %v3099_v45, %v2815_v62 }
 0x48d   : > { %v3113_v31 = vmul.f32 %v3097_v3, %v2807_v50  ;;  %v3304_v41 = vpop.permute.xlu1 %3303 }
 0x48e   : > { %v3123_v61 = vpack.c.bf16 %v3115_v20, %v3114_v40  ;;  %v3308_v0 = vpop.permute.xlu0 %3307 }
 0x48f   : > { %v3122_v42 = vpack.c.bf16 %v3113_v31, %v3112_v32 }
 0x491   : > { %4392 = vmatprep.mubr.bf16.mxu1 %v3122_v42  ;;  %v3312_v13 = vpop.permute.xlu1 %3311 }
 0x492   : > { %4393 = vmatmul.mubr.bf16.gmra.mrb[92].mxu1 %v3123_v61  ;;  %v3316_v22 = vpop.permute.xlu0 %3315 }
 0x495   : > { %v3320_v9 = vpop.permute.xlu1 %3319 }
 0x496   : > { %v3324_v26 = vpop.permute.xlu0 %3323 }
 0x499   : > { %v3328_v29 = vpop.permute.xlu1 %3327 }
 0x49d   : > { %v3336_v53 = vpop.permute.xlu1 %3335 }
 0x4a1   : > { %v3344_v20 = vpop.permute.xlu1 %3343 }
 0x54c   : > { %v4382_v27 = vpop.f32.mrb[80].mxu1 }
 0x54d   : > { %v3240_v38 = vadd.f32 %v4382_v27, %v6320_v6  ;;  %v3231_v43 = vpop.f32.mrb[81].mxu1 }
 0x54e   : > { %v3232_v8 = vadd.f32 %v6320_v6, %v3231_v43  ;;  %v4383_v39 = vpop.f32.mrb[82].mxu1  ;;  %v3352_v43 = vpop.permute.xlu1 %3351 }
 0x54f   : > { %v3360_v19 = vmul.f32 %v3304_v41, %v3240_v38  ;;  %v3243_v7 = vadd.f32 %v4383_v39, %v6320_v6  ;;  %v3234_v10 = vpop.f32.mrb[83].mxu1 }
 0x550   : > { %v3358_v35 = vmul.f32 %v3296_v63, %v3232_v8  ;;  %v3235_v16 = vadd.f32 %v6320_v6, %v3234_v10 }
 0x551   : > { %v3376_v30 = vadd.f32 %v3360_v19, %v6136_v14  ;;  %v3361_v60 = vmul.f32 %v3308_v0, %v3243_v7 }
 0x552   : > { %v3374_v2 = vadd.f32 %v3358_v35, %v6139_v57  ;;  %v3359_v58 = vmul.f32 %v3300_v54, %v3235_v16  ;;  %v3332_v57 = vpop.permute.xlu0 %3331 }
 0x553   : > { %3392 = vst [vmem:[%s6330_s16 + $0x10] sm:$0xff] %v3376_v30  ;;  %v3377_v24 = vadd.f32 %v3361_v60, %v6142_v5  ;;  %v6471_v60 = vld [vmem:[#allocation6_spill] sm:$0xff] }
 0x554   : > { %3390 = vst [vmem:[%s6330_s16] sm:$0xff] %v3374_v2  ;;  %v3375_v17 = vadd.f32 %v3359_v58, %v6145_v44  ;;  %v4386_v25 = vpop.f32.mrb[84].mxu1 }
 0x555   : > { %3393 = vst [vmem:[%s6330_s16 + $0x18] sm:$0xff] %v3377_v24  ;;  %v3256_v15 = vadd.f32 %v4386_v25, %v6320_v6  ;;  %v3247_v37 = vpop.f32.mrb[85].mxu1 }
 0x556   : > { %3391 = vst [vmem:[%s6330_s16 + $0x8] sm:$0xff] %v3375_v17  ;;  %v3248_v14 = vadd.f32 %v6320_v6, %v3247_v37  ;;  %v4387_v56 = vpop.f32.mrb[86].mxu1  ;;  %v3340_v45 = vpop.permute.xlu0 %3339 }
 0x557   : > { %v3364_v23 = vmul.f32 %v3320_v9, %v3256_v15  ;;  %v3259_v5 = vadd.f32 %v4387_v56, %v6320_v6  ;;  %v3250_v52 = vpop.f32.mrb[87].mxu1 }
 0x558   : > { %v3362_v44 = vmul.f32 %v3312_v13, %v3248_v14  ;;  %v3251_v48 = vadd.f32 %v6320_v6, %v3250_v52 }
 0x559   : > { %v3380_v59 = vadd.f32 %v3364_v23, %v6152_v46  ;;  %v3365_v34 = vmul.f32 %v3324_v26, %v3259_v5  ;;  %v6470_v26 = vld [vmem:[#allocation5_spill] sm:$0xff] }
 0x55a   : > { %v3378_v49 = vadd.f32 %v3362_v44, %v6155_v1  ;;  %v3363_v33 = vmul.f32 %v3316_v22, %v3251_v48  ;;  %v3348_v54 = vpop.permute.xlu0 %3347 }
 0x55b   : > { %3396 = vst [vmem:[%s6330_s16 + $0x30] sm:$0xff] %v3380_v59  ;;  %v3381_v4 = vadd.f32 %v3365_v34, %v6158_v51 }
 0x55c   : > { %3394 = vst [vmem:[%s6330_s16 + $0x20] sm:$0xff] %v3378_v49  ;;  %v3379_v55 = vadd.f32 %v3363_v33, %v6161_v47 }
 0x55d   : > { %3397 = vst [vmem:[%s6330_s16 + $0x38] sm:$0xff] %v3381_v4  ;;  %v4390_v40 = vpop.f32.mrb[88].mxu1 }
 0x55e   : > { %3395 = vst [vmem:[%s6330_s16 + $0x28] sm:$0xff] %v3379_v55  ;;  %v3272_v62 = vadd.f32 %v4390_v40, %v6320_v6  ;;  %v3263_v3 = vpop.f32.mrb[89].mxu1  ;;  %v3356_v9 = vpop.permute.xlu0 %3355 }
 0x55f   : > { %v3264_v46 = vadd.f32 %v6320_v6, %v3263_v3  ;;  %v4391_v1 = vpop.f32.mrb[90].mxu1 }
 0x560   : > { %v3368_v32 = vmul.f32 %v3336_v53, %v3272_v62  ;;  %v3275_v50 = vadd.f32 %v4391_v1, %v6320_v6  ;;  %v3266_v51 = vpop.f32.mrb[91].mxu1 }
 0x561   : > { %v3366_v31 = vmul.f32 %v3328_v29, %v3264_v46  ;;  %v3267_v47 = vadd.f32 %v6320_v6, %v3266_v51 }
 0x562   : > { %v3384_v61 = vadd.f32 %v3368_v32, %v6168_v18  ;;  %v3369_v42 = vmul.f32 %v3340_v45, %v3275_v50 }
 0x563   : > { %v3382_v63 = vadd.f32 %v3366_v31, %v6171_v11  ;;  %v3367_v41 = vmul.f32 %v3332_v57, %v3267_v47 }
 0x564   : > { %3400 = vst [vmem:[%s6330_s16 + $0x50] sm:$0xff] %v3384_v61  ;;  %v3385_v0 = vadd.f32 %v3369_v42, %v6174_v36 }
 0x565   : > { %3398 = vst [vmem:[%s6330_s16 + $0x40] sm:$0xff] %v3382_v63  ;;  %v3383_v13 = vadd.f32 %v3367_v41, %v6177_v28  ;;  %v4394_v22 = vpop.f32.mrb[92].mxu1 }
 0x566   : > { %3401 = vst [vmem:[%s6330_s16 + $0x58] sm:$0xff] %v3385_v0  ;;  %v3288_v27 = vadd.f32 %v4394_v22, %v6320_v6  ;;  %v3279_v38 = vpop.f32.mrb[93].mxu1 }
 0x567   : > { %3399 = vst [vmem:[%s6330_s16 + $0x48] sm:$0xff] %v3383_v13  ;;  %v3280_v18 = vadd.f32 %v6320_v6, %v3279_v38  ;;  %v4395_v11 = vpop.f32.mrb[94].mxu1 }
 0x568   : > { %v3372_v8 = vmul.f32 %v3352_v43, %v3288_v27  ;;  %v3291_v36 = vadd.f32 %v4395_v11, %v6320_v6  ;;  %v3282_v39 = vpop.f32.mrb[95].mxu1 }
 0x569   : > { %v3370_v28 = vmul.f32 %v3344_v20, %v3280_v18  ;;  %v3283_v19 = vadd.f32 %v6320_v6, %v3282_v39 }
 0x56a   : > { %v3388_v7 = vadd.f32 %v3372_v8, %v6184_v21  ;;  %v3373_v10 = vmul.f32 %v3356_v9, %v3291_v36 }
 0x56b   : > { %v3386_v35 = vadd.f32 %v3370_v28, %v6187_v12  ;;  %v3371_v16 = vmul.f32 %v3348_v54, %v3283_v19 }
 0x56c   : > { %3404 = vst [vmem:[%s6330_s16 + $0x70] sm:$0xff] %v3388_v7  ;;  %v3389_v30 = vadd.f32 %v3373_v10, %v6470_v26 }
 0x56d   : > { %3402 = vst [vmem:[%s6330_s16 + $0x60] sm:$0xff] %v3386_v35  ;;  %v3387_v2 = vadd.f32 %v3371_v16, %v6471_v60 }
 0x56e   : > { %3405 = vst [vmem:[%s6330_s16 + $0x78] sm:$0xff] %v3389_v30 }
 0x56f   : > { %3403 = vst [vmem:[%s6330_s16 + $0x68] sm:$0xff] %v3387_v2 }
 0x570 PF: > { %s18_s27 = sadd.s32 1, %s4814_s27  }
 0x571   : > { %p15_p4 = scmp.ge.s32.totalorder %s18_s27, 4  }
 0x573   :  { %17 = sbr.rel (!%p15_p4) target bundleno = 1 (0x1), region = 103 }

</bundles_post_ra>
